<compile_context>
chip_gen: v6e
topology: v6e:2x2x1
jax: 0.10.0
libtpu: 0.0.40
codegen_flags: <defaults>
</compile_context>

<pallas_src>
import functools
import math
from types import SimpleNamespace

import jax
import jax.numpy as jnp
import numpy as np
from jax.experimental import pallas as pl
from jax.experimental.pallas import tpu as pltpu

_GELU_K0 = 0.7978845608028654  # sqrt(2/pi)
_GELU_K1 = 0.044715


def _gelu(x):
    # tanh-approx GELU: tanh goes to the EUP slot, keeping the VALU free.
    return 0.5 * x * (1.0 + jnp.tanh(_GELU_K0 * (x + _GELU_K1 * x * x * x)))


def _round_up(x, m):
    return ((x + m - 1) // m) * m


@functools.lru_cache(maxsize=None)
def _vmem_limit_bytes():
    """Generation-aware scoped-VMEM limit (set explicitly: v5e's default is only 16 MiB)."""
    try:
        cap = int(pltpu.get_tpu_info().vmem_capacity_bytes)
    except Exception:
        return 32 << 20
    if cap <= (64 << 20):          # v7x-class: 64 MiB physical VMEM -> leave headroom
        return 48 << 20
    return 100 << 20               # v5e / v6e: 128 MiB physical VMEM


def _compiler_params(dims):
    return pltpu.CompilerParams(dimension_semantics=dims,
                                vmem_limit_bytes=_vmem_limit_bytes())


def _full_spec(shape):
    zeros = (0,) * len(shape)
    return pl.BlockSpec(shape, lambda i, _z=zeros: _z)


# ----------------------------------------------------------------------------
# Kernel 1: fused DiffusionEmbedding projection + all per-layer modulations
# (runs once per forward pass)
# ----------------------------------------------------------------------------
def _time_mod_kernel(*refs, block_meta, n_blocks):
    emb_ref = refs[0]
    te1_w, te1_b, te2_w, te2_b = refs[1:5]
    mod_refs = refs[5:5 + 2 * n_blocks]
    out_refs = refs[5 + 2 * n_blocks:]

    def cl(a, w_ref, b_ref):
        # one block-structured complex matmul (bf16 MXU inputs, f32 accumulation)
        return jnp.dot(a.astype(jnp.bfloat16), w_ref[...],
                       preferred_element_type=jnp.float32) + b_ref[...]

    emb = emb_ref[...]                                   # (B, 2E) packed [real | imag]
    temb = cl(_gelu(cl(emb, te1_w, te1_b)), te2_w, te2_b)  # DiffusionEmbedding projection
    g = _gelu(temb)                                      # ComplexGELU(t), shared by all blocks

    for l in range(n_blocks):
        in_d, out_d, rows = block_meta[l]
        dm = 2 * in_d + out_d                            # [shift | scale | gate]
        mod = cl(g, mod_refs[2 * l], mod_refs[2 * l + 1])  # (B, 2*dm) packed
        sh_r = mod[:, 0:in_d]
        sc_r = mod[:, in_d:2 * in_d]
        ga_r = mod[:, 2 * in_d:dm]
        sh_i = mod[:, dm:dm + in_d]
        sc_i = mod[:, dm + in_d:dm + 2 * in_d]
        ga_i = mod[:, dm + 2 * in_d:]
        op_r = 1.0 + sc_r                                # m = (1 + scale) * shift
        m_r = op_r * sh_r - sc_i * sh_i
        m_i = op_r * sh_i + sc_i * sh_r
        mv = jnp.concatenate([m_r, m_i, ga_r, ga_i], axis=-1)   # (B, 2*(in_d+out_d))
        out_refs[l][...] = jnp.broadcast_to(mv[:, None, :], out_refs[l].shape)


def compute_modulations(te_params, t, blocks, rows_list):
    """One pallas_call: time-embedding MLP + every block's shift/scale/gate, broadcast to
    per-row modulation vectors [m_r | m_i | gate_r | gate_i] of shape (B, rows, 2*(in+out))."""
    emb = te_params["embedding"][t]                      # (B, E) complex table gather (XLA)
    B = emb.shape[0]
    emb_ri = jnp.concatenate([jnp.real(emb), jnp.imag(emb)], axis=-1).astype(jnp.float32)

    tek = te_params["kernel"]
    args = [emb_ri, tek["l1"]["w"], tek["l1"]["b"], tek["l2"]["w"], tek["l2"]["b"]]
    in_specs = [_full_spec(a.shape) for a in args]

    block_meta, out_shapes, out_specs = [], [], []
    for blk, rows in zip(blocks, rows_list):
        mk = blk["kernel"]["mod"]
        args += [mk["w"], mk["b"]]
        in_specs += [_full_spec(mk["w"].shape), _full_spec(mk["b"].shape)]
        in_d, out_d = blk["in_dim"], blk["out_dim"]
        block_meta.append((in_d, out_d, rows))
        width = 2 * (in_d + out_d)
        out_shapes.append(jax.ShapeDtypeStruct((B, rows, width), jnp.float32))
        out_specs.append(_full_spec((B, rows, width)))

    kernel = functools.partial(_time_mod_kernel, block_meta=tuple(block_meta),
                               n_blocks=len(blocks))
    outs = pl.pallas_call(
        kernel,
        out_shape=tuple(out_shapes),
        grid=(1,),
        in_specs=in_specs,
        out_specs=out_specs,
        compiler_params=_compiler_params(("arbitrary",)),
    )(*args)
    return list(outs)


# ----------------------------------------------------------------------------
# Kernel 2: fused LinearBlock (modulate -> CL -> CGELU -> CL -> gate -> +residual)
# ----------------------------------------------------------------------------
def _linear_block_kernel(x_ref, mod_ref, w1_ref, b1_ref, w2_ref, b2_ref, out_ref,
                         *, in_dim, out_dim, fuse_residual):
    x = x_ref[...]                                       # (ts, 2*in) packed [real | imag]
    mv = mod_ref[...]                                    # (ts, 2*in + 2*out)
    x_r, x_i = x[:, :in_dim], x[:, in_dim:]
    m_r, m_i = mv[:, :in_dim], mv[:, in_dim:2 * in_dim]
    g_r = mv[:, 2 * in_dim:2 * in_dim + out_dim]
    g_i = mv[:, 2 * in_dim + out_dim:]

    xm_r = x_r * m_r - x_i * m_i                         # x * (1 + scale) * shift
    xm_i = x_r * m_i + x_i * m_r
    xm = jnp.concatenate([xm_r, xm_i], axis=-1).astype(jnp.bfloat16)

    # ComplexLinear 1 (single block matmul) + ComplexGELU
    h = _gelu(jnp.dot(xm, w1_ref[...], preferred_element_type=jnp.float32) + b1_ref[...])
    # ComplexLinear 2
    y = jnp.dot(h.astype(jnp.bfloat16), w2_ref[...],
                preferred_element_type=jnp.float32) + b2_ref[...]

    y_r, y_i = y[:, :out_dim], y[:, out_dim:]
    o_r = g_r * y_r - g_i * y_i                          # gate * y
    o_i = g_r * y_i + g_i * y_r
    if fuse_residual:
        o_r = o_r + x_r
        o_i = o_i + x_i

    # two half-stores (result is already split; no concat before the store)
    out_ref[:, :out_dim] = o_r
    out_ref[:, out_dim:] = o_i


def _row_tile(R, tm):
    if R <= tm:
        return R, R                      # full-extent block: no (8,128) constraint
    nt = -(-R // tm)
    ts = _round_up(-(-R // nt), 8)
    return ts, ts * nt


def _modulated_block_call(blk, x_flat, mod_flat, *, fuse_residual=True, tm=1024):
    """x_flat: (B*rows, 2*in_dim) packed; mod_flat: (B*rows, 2*(in_dim+out_dim))."""
    in_dim, out_dim = blk["in_dim"], blk["out_dim"]
    kp = blk["kernel"]
    R = x_flat.shape[0]
    ts, R_pad = _row_tile(R, tm)
    if R_pad != R:
        x_flat = jnp.pad(x_flat, ((0, R_pad - R), (0, 0)))
        mod_flat = jnp.pad(mod_flat, ((0, R_pad - R), (0, 0)))

    kernel = functools.partial(_linear_block_kernel, in_dim=in_dim, out_dim=out_dim,
                               fuse_residual=fuse_residual)
    out = pl.pallas_call(
        kernel,
        out_shape=jax.ShapeDtypeStruct((R_pad, 2 * out_dim), jnp.float32),
        grid=(R_pad // ts,),
        in_specs=[pl.BlockSpec((ts, 2 * in_dim), lambda i: (i, 0)),
                  pl.BlockSpec((ts, 2 * (in_dim + out_dim)), lambda i: (i, 0)),
                  pl.BlockSpec(kp["l1"]["w"].shape, lambda i: (0, 0)),
                  pl.BlockSpec(kp["l1"]["b"].shape, lambda i: (0, 0)),
                  pl.BlockSpec(kp["l2"]["w"].shape, lambda i: (0, 0)),
                  pl.BlockSpec(kp["l2"]["b"].shape, lambda i: (0, 0))],
        out_specs=pl.BlockSpec((ts, 2 * out_dim), lambda i: (i, 0)),
        compiler_params=_compiler_params(("parallel",)),
    )(x_flat, mod_flat, kp["l1"]["w"], kp["l1"]["b"], kp["l2"]["w"], kp["l2"]["b"])
    return out[:R] if R_pad != R else out


def _swap_packed(x, B, R, D):
    """Packed-complex transpose: (B*R, 2*D) [real|imag over D] -> (B*D, 2*R)."""
    return x.reshape(B, R, 2, D).transpose(0, 3, 2, 1).reshape(B * D, 2 * R)


# ----------------------------------------------------------------------------
# Parameter init / preparation
# ----------------------------------------------------------------------------
def _init_complex_linear(key, in_dim, out_dim):
    # mimics nn.Linear init: U(-1/sqrt(fan_in), 1/sqrt(fan_in)); weights stored (in, out).
    kwr, kwi, kbr, kbi = jax.random.split(key, 4)
    bound = 1.0 / math.sqrt(in_dim)
    u = lambda k, s: jax.random.uniform(k, s, jnp.float32, -bound, bound)
    return {"wr": u(kwr, (in_dim, out_dim)), "wi": u(kwi, (in_dim, out_dim)),
            "br": u(kbr, (1, out_dim)), "bi": u(kbi, (1, out_dim))}


def _prep_block_cl(p):
    # block-structured weight: [[Wr, Wi], [-Wi, Wr]] (2*in, 2*out) bf16; effective complex
    # bias of apply_complex: real = br - bi, imag = br + bi (f32).
    wr, wi = p["wr"], p["wi"]
    w_blk = jnp.concatenate([jnp.concatenate([wr, wi], axis=1),
                             jnp.concatenate([-wi, wr], axis=1)], axis=0).astype(jnp.bfloat16)
    b_blk = jnp.concatenate([p["br"] - p["bi"], p["br"] + p["bi"]], axis=1).astype(jnp.float32)
    return {"w": w_blk, "b": b_blk}


def _prep_fused_mod(shift, scale, gate):
    # Fuse shift/scale/gate ComplexLinears into one by concatenating output dims.
    cat = lambda k: jnp.concatenate([shift[k], scale[k], gate[k]], axis=1)
    return _prep_block_cl({"wr": cat("wr"), "wi": cat("wi"), "br": cat("br"), "bi": cat("bi")})


def init_linear_block(key, in_dim, out_dim, mid=None, flat=2, embed=None):
    if mid is None:
        mid = int(in_dim * flat) if in_dim > out_dim else int(out_dim * flat)
    k1, k2, ks, kh, kg = jax.random.split(key, 5)
    params = {"in_dim": in_dim, "mid_dim": mid, "out_dim": out_dim,
              "embed": embed is not None, "embed_dim": embed,
              "l1": _init_complex_linear(k1, in_dim, mid),
              "l2": _init_complex_linear(k2, mid, out_dim)}
    kernel = {"l1": _prep_block_cl(params["l1"]), "l2": _prep_block_cl(params["l2"])}
    if embed is not None:
        params["scale"] = _init_complex_linear(ks, embed, in_dim)
        params["shift"] = _init_complex_linear(kh, embed, in_dim)
        params["gate"] = _init_complex_linear(kg, embed, out_dim)
        kernel["mod"] = _prep_fused_mod(params["shift"], params["scale"], params["gate"])
    params["kernel"] = kernel
    return params


def init_diffusion_embedding(key, max_step, embed_dim, flat=2):
    mid = int(embed_dim * flat)
    k1, k2 = jax.random.split(key)
    steps = jnp.arange(max_step, dtype=jnp.float32)[:, None]
    dims = jnp.arange(embed_dim, dtype=jnp.float32)[None, :]
    table = steps * jnp.exp(-math.log(max_step) * dims / embed_dim)
    emb = jax.lax.complex(jnp.cos(table), jnp.sin(table))            # exp(1j * table)
    params = {"embedding": emb, "embed_dim": embed_dim, "mid_dim": mid,
              "l1": _init_complex_linear(k1, embed_dim, mid),
              "l2": _init_complex_linear(k2, mid, embed_dim)}
    params["kernel"] = {"l1": _prep_block_cl(params["l1"]), "l2": _prep_block_cl(params["l2"])}
    return params


def init_model(key, configs, configs_car, configs_ant):
    assert configs_car.model == "Linear" and configs_ant.model == "Linear"
    kcar, kant, kte = jax.random.split(key, 3)
    params = {"num_layers": configs.num_layers,
              "framework_indicator": 0 if configs.car_first == 1 else 1}

    def make_layers(k, cfg):
        keys = jax.random.split(k, configs.num_layers)
        layers = [init_linear_block(keys[0], cfg.input_len, cfg.seq_len,
                                    flat=cfg.flat, embed=cfg.embed_dim)]
        for i in range(1, configs.num_layers):
            layers.append(init_linear_block(keys[i], cfg.seq_len, cfg.seq_len,
                                            flat=cfg.flat, embed=cfg.embed_dim))
        return layers

    params["car_layers"] = make_layers(kcar, configs_car)
    params["ant_layers"] = make_layers(kant, configs_ant)
    params["time_embedding"] = init_diffusion_embedding(
        kte, configs.num_train_timesteps, configs_car.embed_dim, configs_ant.flat)
    return params


# ----------------------------------------------------------------------------
# Model forward
# ----------------------------------------------------------------------------
def model_forward(params, xx, t, *, tm=1024):
    """xx: complex64 (B, ant_len, car_len); t: int timesteps (B,)."""
    # TODO(synk): float-timestep _lerp_embedding path not implemented (integer t only).
    B, A, C = xx.shape
    L = params["num_layers"]
    car, ant = params["car_layers"], params["ant_layers"]

    blocks, rows = [], []
    for i in range(L):
        blocks.append(car[i]); rows.append(A)      # car blocks: act on car dim, A rows/batch
        blocks.append(ant[i]); rows.append(C)      # ant blocks: act on ant dim, C rows/batch
    for blk in blocks:
        assert blk["in_dim"] == blk["out_dim"], \
            "residual add (xx + block(xx)) requires in_dim == out_dim"

    mods = compute_modulations(params["time_embedding"], t, blocks, rows)
    mods = [m.reshape(-1, m.shape[-1]) for m in mods]       # (B*rows, 2*(in+out))

    # Single complex -> packed-RI conversion for the whole model.
    x = jnp.concatenate([jnp.real(xx), jnp.imag(xx)], axis=-1).astype(jnp.float32)
    x = x.reshape(B * A, 2 * C)

    if params["framework_indicator"] == 0:
        for i in range(L):
            x = _modulated_block_call(car[i], x, mods[2 * i], tm=tm)
            x = _swap_packed(x, B, A, C)
            x = _modulated_block_call(ant[i], x, mods[2 * i + 1], tm=tm)
            x = _swap_packed(x, B, C, A)
    else:
        for i in range(L):
            x = _swap_packed(x, B, A, C)
            x = _modulated_block_call(ant[i], x, mods[2 * i + 1], tm=tm)
            x = _swap_packed(x, B, C, A)
            x = _modulated_block_call(car[i], x, mods[2 * i], tm=tm)

    out = x.reshape(B, A, 2 * C)
    return jax.lax.complex(out[..., :C], out[..., C:])


# ----------------------------------------------------------------------------
# Pure-JAX reference (exact erf GELU, HIGHEST-precision f32 matmuls)
# ----------------------------------------------------------------------------
def _ref_cl(x, p):
    hp = jax.lax.Precision.HIGHEST
    fr = lambda a: jnp.dot(a, p["wr"], precision=hp) + p["br"][0]
    fi = lambda a: jnp.dot(a, p["wi"], precision=hp) + p["bi"][0]
    xr, xi = jnp.real(x), jnp.imag(x)
    return jax.lax.complex(fr(xr) - fi(xi), fr(xi) + fi(xr))


def _ref_cgelu(x):
    g = lambda a: 0.5 * a * (1.0 + jax.scipy.special.erf(a / math.sqrt(2.0)))
    return jax.lax.complex(g(jnp.real(x)), g(jnp.imag(x)))


def linear_block_ref(params, x, t=None):
    layers = lambda z: _ref_cl(_ref_cgelu(_ref_cl(z, params["l1"])), params["l2"])
    if params["embed"] and t is not None:
        t3 = t.reshape(t.shape[0], 1, -1)
        shift = _ref_cl(_ref_cgelu(t3), params["shift"])
        scale = _ref_cl(_ref_cgelu(t3), params["scale"])
        gate = _ref_cl(_ref_cgelu(t3), params["gate"])
        xm = x * (1 + scale) * shift
        return gate * layers(xm)
    return layers(x)


def model_ref(params, xx, t):
    te = params["time_embedding"]
    temb = _ref_cl(_ref_cgelu(_ref_cl(te["embedding"][t][:, None, :], te["l1"])), te["l2"])
    if params["framework_indicator"] == 0:
        for i in range(params["num_layers"]):
            xx = xx + linear_block_ref(params["car_layers"][i], xx, temb)
            xx = jnp.swapaxes(xx, -1, -2)
            xx = xx + linear_block_ref(params["ant_layers"][i], xx, temb)
            xx = jnp.swapaxes(xx, -1, -2)
    else:
        for i in range(params["num_layers"]):
            xx = jnp.swapaxes(xx, -1, -2)
            xx = xx + linear_block_ref(params["ant_layers"][i], xx, temb)
            xx = jnp.swapaxes(xx, -1, -2)
            xx = xx + linear_block_ref(params["car_layers"][i], xx, temb)
    return xx


# ----------------------------------------------------------------------------
if __name__ == "__main__":
    configs = SimpleNamespace(channel_independence=1, num_layers=2, car_first=1,
                              num_train_timesteps=50)
    configs_car = SimpleNamespace(model="Linear", input_len=16, seq_len=16, flat=2,
                                  embed_dim=16)
    configs_ant = SimpleNamespace(model="Linear", input_len=8, seq_len=8, flat=2,
                                  embed_dim=16)

    root = jax.random.PRNGKey(0)
    kparam, kxr, kxi, kt = jax.random.split(root, 4)

    B = 2
    # xx: (B, ant_len, car_len) complex — the car blocks act on the last dim first.
    xx = jax.lax.complex(
        jax.random.normal(kxr, (B, configs_ant.input_len, configs_car.input_len), jnp.float32),
        jax.random.normal(kxi, (B, configs_ant.input_len, configs_car.input_len), jnp.float32))
    t = jax.random.randint(kt, (B,), 0, configs.num_train_timesteps)

    params = init_model(kparam, configs, configs_car, configs_ant)

    fwd = jax.jit(lambda xx_, t_: model_forward(params, xx_, t_))
    out = jax.block_until_ready(fwd(xx, t))
    ref = model_ref(params, xx, t)

    # Tolerance covers bf16 MXU inputs + tanh-approx GELU vs exact erf reference.
    np.testing.assert_allclose(np.asarray(out), np.asarray(ref), rtol=2e-2, atol=2e-2)

    print("KERNEL_OK")
</pallas_src>

<mosaic_0001>
module attributes {stable_mosaic.version = 11 : i64} {
  func.func @_linear_block_kernel(%arg0: i32, %arg1: memref<16x32xf32, #tpu.memory_space<vmem>>, %arg2: memref<16x64xf32, #tpu.memory_space<vmem>>, %arg3: memref<32x64xbf16, #tpu.memory_space<vmem>>, %arg4: memref<1x64xf32, #tpu.memory_space<vmem>>, %arg5: memref<64x32xbf16, #tpu.memory_space<vmem>>, %arg6: memref<1x32xf32, #tpu.memory_space<vmem>>, %arg7: memref<16x32xf32, #tpu.memory_space<vmem>>) attributes {dimension_semantics = [#tpu.dimension_semantics<parallel>], iteration_bounds = array<i64: 1>, scalar_prefetch = 0 : i64, scratch_operands = 0 : i64, tpu.core_type = #tpu.core_type<tc>, window_params = [{transform_indices = @transform_0, window_bounds = array<i64: 16, 32>}, {transform_indices = @transform_1, window_bounds = array<i64: 16, 64>}, {pipeline_mode = #tpu.pipeline_mode<synchronous>, transform_indices = @transform_2, window_bounds = array<i64: 32, 64>}, {pipeline_mode = #tpu.pipeline_mode<synchronous>, transform_indices = @transform_3, window_bounds = array<i64: 1, 64>}, {pipeline_mode = #tpu.pipeline_mode<synchronous>, transform_indices = @transform_4, window_bounds = array<i64: 64, 32>}, {pipeline_mode = #tpu.pipeline_mode<synchronous>, transform_indices = @transform_5, window_bounds = array<i64: 1, 32>}, {transform_indices = @transform_6, window_bounds = array<i64: 16, 32>}]} {
    %c0 = arith.constant 0 : index
    %c0_0 = arith.constant 0 : index
    %0 = vector.load %arg1[%c0, %c0_0] : memref<16x32xf32, #tpu.memory_space<vmem>>, vector<16x32xf32>
    %c0_1 = arith.constant 0 : index
    %c0_2 = arith.constant 0 : index
    %1 = vector.load %arg2[%c0_1, %c0_2] : memref<16x64xf32, #tpu.memory_space<vmem>>, vector<16x64xf32>
    %2 = vector.extract_strided_slice %0 {offsets = [0, 0], sizes = [16, 16], strides = [1, 1]} : vector<16x32xf32> to vector<16x16xf32>
    %3 = vector.extract_strided_slice %0 {offsets = [0, 16], sizes = [16, 16], strides = [1, 1]} : vector<16x32xf32> to vector<16x16xf32>
    %4 = vector.extract_strided_slice %1 {offsets = [0, 0], sizes = [16, 16], strides = [1, 1]} : vector<16x64xf32> to vector<16x16xf32>
    %5 = vector.extract_strided_slice %1 {offsets = [0, 16], sizes = [16, 16], strides = [1, 1]} : vector<16x64xf32> to vector<16x16xf32>
    %6 = vector.extract_strided_slice %1 {offsets = [0, 32], sizes = [16, 16], strides = [1, 1]} : vector<16x64xf32> to vector<16x16xf32>
    %7 = vector.extract_strided_slice %1 {offsets = [0, 48], sizes = [16, 16], strides = [1, 1]} : vector<16x64xf32> to vector<16x16xf32>
    %8 = arith.mulf %2, %4 : vector<16x16xf32>
    %9 = arith.mulf %3, %5 : vector<16x16xf32>
    %10 = arith.subf %8, %9 : vector<16x16xf32>
    %11 = arith.mulf %2, %5 : vector<16x16xf32>
    %12 = arith.mulf %3, %4 : vector<16x16xf32>
    %13 = arith.addf %11, %12 : vector<16x16xf32>
    %14 = tpu.concatenate %10, %13 in 1 : vector<16x16xf32>, vector<16x16xf32> -> vector<16x32xf32>
    %15 = arith.truncf %14 : vector<16x32xf32> to vector<16x32xbf16>
    %c0_3 = arith.constant 0 : index
    %c0_4 = arith.constant 0 : index
    %16 = vector.load %arg3[%c0_3, %c0_4] : memref<32x64xbf16, #tpu.memory_space<vmem>>, vector<32x64xbf16>
    %cst = arith.constant dense<0.000000e+00> : vector<16x64xf32>
    %17 = tpu.matmul %15, %16, %cst {dimension_numbers = #tpu.dot_dimension_numbers<[1], [0], [0], [1], [0, 0, 1, 1], [], []>} : vector<16x32xbf16>, vector<32x64xbf16>, vector<16x64xf32> -> vector<16x64xf32>
    %c0_5 = arith.constant 0 : index
    %c0_6 = arith.constant 0 : index
    %18 = vector.load %arg4[%c0_5, %c0_6] : memref<1x64xf32, #tpu.memory_space<vmem>>, vector<1x64xf32>
    %19 = vector.broadcast %18 : vector<1x64xf32> to vector<16x64xf32>
    %20 = arith.addf %17, %19 : vector<16x64xf32>
    %cst_7 = arith.constant 5.000000e-01 : f32
    %21 = vector.broadcast %cst_7 : f32 to vector<16x64xf32>
    %22 = arith.mulf %21, %20 : vector<16x64xf32>
    %cst_8 = arith.constant 4.471500e-02 : f32
    %23 = vector.broadcast %cst_8 : f32 to vector<16x64xf32>
    %24 = arith.mulf %23, %20 : vector<16x64xf32>
    %25 = arith.mulf %24, %20 : vector<16x64xf32>
    %26 = arith.mulf %25, %20 : vector<16x64xf32>
    %27 = arith.addf %20, %26 : vector<16x64xf32>
    %cst_9 = arith.constant 0.797884583 : f32
    %28 = vector.broadcast %cst_9 : f32 to vector<16x64xf32>
    %29 = arith.mulf %28, %27 : vector<16x64xf32>
    %30 = math.tanh %29 : vector<16x64xf32>
    %cst_10 = arith.constant 1.000000e+00 : f32
    %31 = vector.broadcast %cst_10 : f32 to vector<16x64xf32>
    %32 = arith.addf %31, %30 : vector<16x64xf32>
    %33 = arith.mulf %22, %32 : vector<16x64xf32>
    %34 = arith.truncf %33 : vector<16x64xf32> to vector<16x64xbf16>
    %c0_11 = arith.constant 0 : index
    %c0_12 = arith.constant 0 : index
    %35 = vector.load %arg5[%c0_11, %c0_12] : memref<64x32xbf16, #tpu.memory_space<vmem>>, vector<64x32xbf16>
    %cst_13 = arith.constant dense<0.000000e+00> : vector<16x32xf32>
    %36 = tpu.matmul %34, %35, %cst_13 {dimension_numbers = #tpu.dot_dimension_numbers<[1], [0], [0], [1], [0, 0, 1, 1], [], []>} : vector<16x64xbf16>, vector<64x32xbf16>, vector<16x32xf32> -> vector<16x32xf32>
    %c0_14 = arith.constant 0 : index
    %c0_15 = arith.constant 0 : index
    %37 = vector.load %arg6[%c0_14, %c0_15] : memref<1x32xf32, #tpu.memory_space<vmem>>, vector<1x32xf32>
    %38 = vector.broadcast %37 : vector<1x32xf32> to vector<16x32xf32>
    %39 = arith.addf %36, %38 : vector<16x32xf32>
    %40 = vector.extract_strided_slice %39 {offsets = [0, 0], sizes = [16, 16], strides = [1, 1]} : vector<16x32xf32> to vector<16x16xf32>
    %41 = vector.extract_strided_slice %39 {offsets = [0, 16], sizes = [16, 16], strides = [1, 1]} : vector<16x32xf32> to vector<16x16xf32>
    %42 = arith.mulf %6, %40 : vector<16x16xf32>
    %43 = arith.mulf %7, %41 : vector<16x16xf32>
    %44 = arith.subf %42, %43 : vector<16x16xf32>
    %45 = arith.mulf %6, %41 : vector<16x16xf32>
    %46 = arith.mulf %7, %40 : vector<16x16xf32>
    %47 = arith.addf %45, %46 : vector<16x16xf32>
    %48 = arith.addf %44, %2 : vector<16x16xf32>
    %49 = arith.addf %47, %3 : vector<16x16xf32>
    %c0_16 = arith.constant 0 : index
    %c0_17 = arith.constant 0 : index
    %50 = vector.load %arg7[%c0_16, %c0_17] : memref<16x32xf32, #tpu.memory_space<vmem>>, vector<16x16xf32>
    tpu.vector_store %arg7[%c0_16, %c0_17], %48 {strides = array<i32>} : memref<16x32xf32, #tpu.memory_space<vmem>>, vector<16x16xf32>,
    %c0_18 = arith.constant 0 : index
    %c16 = arith.constant 16 : index
    %51 = vector.load %arg7[%c0_18, %c16] : memref<16x32xf32, #tpu.memory_space<vmem>>, vector<16x16xf32>
    tpu.vector_store %arg7[%c0_18, %c16], %49 {strides = array<i32>} : memref<16x32xf32, #tpu.memory_space<vmem>>, vector<16x16xf32>,
    return
  }
  func.func @transform_0(%arg0: i32) -> (i32, i32) {
    %c0_i32 = arith.constant 0 : i32
    %c0_i32_0 = arith.constant 0 : i32
    return %arg0, %c0_i32 : i32, i32
  }
  func.func @transform_1(%arg0: i32) -> (i32, i32) {
    %c0_i32 = arith.constant 0 : i32
    %c0_i32_0 = arith.constant 0 : i32
    return %arg0, %c0_i32 : i32, i32
  }
  func.func @transform_2(%arg0: i32) -> (i32, i32) {
    %c0_i32 = arith.constant 0 : i32
    %c0_i32_0 = arith.constant 0 : i32
    %c0_i32_1 = arith.constant 0 : i32
    return %c0_i32, %c0_i32_0 : i32, i32
  }
  func.func @transform_3(%arg0: i32) -> (i32, i32) {
    %c0_i32 = arith.constant 0 : i32
    %c0_i32_0 = arith.constant 0 : i32
    %c0_i32_1 = arith.constant 0 : i32
    return %c0_i32, %c0_i32_0 : i32, i32
  }
  func.func @transform_4(%arg0: i32) -> (i32, i32) {
    %c0_i32 = arith.constant 0 : i32
    %c0_i32_0 = arith.constant 0 : i32
    %c0_i32_1 = arith.constant 0 : i32
    return %c0_i32, %c0_i32_0 : i32, i32
  }
  func.func @transform_5(%arg0: i32) -> (i32, i32) {
    %c0_i32 = arith.constant 0 : i32
    %c0_i32_0 = arith.constant 0 : i32
    %c0_i32_1 = arith.constant 0 : i32
    return %c0_i32, %c0_i32_0 : i32, i32
  }
  func.func @transform_6(%arg0: i32) -> (i32, i32) {
    %c0_i32 = arith.constant 0 : i32
    %c0_i32_0 = arith.constant 0 : i32
    return %arg0, %c0_i32 : i32, i32
  }
}

module attributes {stable_mosaic.version = 11 : i64} {
  func.func @_time_mod_kernel(%arg0: i32, %arg1: memref<2x32xf32, #tpu.memory_space<vmem>>, %arg2: memref<32x64xbf16, #tpu.memory_space<vmem>>, %arg3: memref<1x64xf32, #tpu.memory_space<vmem>>, %arg4: memref<64x32xbf16, #tpu.memory_space<vmem>>, %arg5: memref<1x32xf32, #tpu.memory_space<vmem>>, %arg6: memref<32x96xbf16, #tpu.memory_space<vmem>>, %arg7: memref<1x96xf32, #tpu.memory_space<vmem>>, %arg8: memref<32x48xbf16, #tpu.memory_space<vmem>>, %arg9: memref<1x48xf32, #tpu.memory_space<vmem>>, %arg10: memref<32x96xbf16, #tpu.memory_space<vmem>>, %arg11: memref<1x96xf32, #tpu.memory_space<vmem>>, %arg12: memref<32x48xbf16, #tpu.memory_space<vmem>>, %arg13: memref<1x48xf32, #tpu.memory_space<vmem>>, %arg14: memref<2x8x64xf32, #tpu.memory_space<vmem>>, %arg15: memref<2x16x32xf32, #tpu.memory_space<vmem>>, %arg16: memref<2x8x64xf32, #tpu.memory_space<vmem>>, %arg17: memref<2x16x32xf32, #tpu.memory_space<vmem>>) attributes {dimension_semantics = [#tpu.dimension_semantics<arbitrary>], iteration_bounds = array<i64: 1>, scalar_prefetch = 0 : i64, scratch_operands = 0 : i64, tpu.core_type = #tpu.core_type<tc>, window_params = [{pipeline_mode = #tpu.pipeline_mode<synchronous>, transform_indices = @transform_0, window_bounds = array<i64: 2, 32>}, {pipeline_mode = #tpu.pipeline_mode<synchronous>, transform_indices = @transform_1, window_bounds = array<i64: 32, 64>}, {pipeline_mode = #tpu.pipeline_mode<synchronous>, transform_indices = @transform_2, window_bounds = array<i64: 1, 64>}, {pipeline_mode = #tpu.pipeline_mode<synchronous>, transform_indices = @transform_3, window_bounds = array<i64: 64, 32>}, {pipeline_mode = #tpu.pipeline_mode<synchronous>, transform_indices = @transform_4, window_bounds = array<i64: 1, 32>}, {pipeline_mode = #tpu.pipeline_mode<synchronous>, transform_indices = @transform_5, window_bounds = array<i64: 32, 96>}, {pipeline_mode = #tpu.pipeline_mode<synchronous>, transform_indices = @transform_6, window_bounds = array<i64: 1, 96>}, {pipeline_mode = #tpu.pipeline_mode<synchronous>, transform_indices = @transform_7, window_bounds = array<i64: 32, 48>}, {pipeline_mode = #tpu.pipeline_mode<synchronous>, transform_indices = @transform_8, window_bounds = array<i64: 1, 48>}, {pipeline_mode = #tpu.pipeline_mode<synchronous>, transform_indices = @transform_9, window_bounds = array<i64: 32, 96>}, {pipeline_mode = #tpu.pipeline_mode<synchronous>, transform_indices = @transform_10, window_bounds = array<i64: 1, 96>}, {pipeline_mode = #tpu.pipeline_mode<synchronous>, transform_indices = @transform_11, window_bounds = array<i64: 32, 48>}, {pipeline_mode = #tpu.pipeline_mode<synchronous>, transform_indices = @transform_12, window_bounds = array<i64: 1, 48>}, {pipeline_mode = #tpu.pipeline_mode<synchronous>, transform_indices = @transform_13, window_bounds = array<i64: 2, 8, 64>}, {pipeline_mode = #tpu.pipeline_mode<synchronous>, transform_indices = @transform_14, window_bounds = array<i64: 2, 16, 32>}, {pipeline_mode = #tpu.pipeline_mode<synchronous>, transform_indices = @transform_15, window_bounds = array<i64: 2, 8, 64>}, {pipeline_mode = #tpu.pipeline_mode<synchronous>, transform_indices = @transform_16, window_bounds = array<i64: 2, 16, 32>}]} {
    %c0 = arith.constant 0 : index
    %c0_0 = arith.constant 0 : index
    %0 = vector.load %arg1[%c0, %c0_0] : memref<2x32xf32, #tpu.memory_space<vmem>>, vector<2x32xf32>
    %1 = arith.truncf %0 : vector<2x32xf32> to vector<2x32xbf16>
    %c0_1 = arith.constant 0 : index
    %c0_2 = arith.constant 0 : index
    %2 = vector.load %arg2[%c0_1, %c0_2] : memref<32x64xbf16, #tpu.memory_space<vmem>>, vector<32x64xbf16>
    %cst = arith.constant dense<0.000000e+00> : vector<2x64xf32>
    %3 = tpu.matmul %1, %2, %cst {dimension_numbers = #tpu.dot_dimension_numbers<[1], [0], [0], [1], [0, 0, 1, 1], [], []>} : vector<2x32xbf16>, vector<32x64xbf16>, vector<2x64xf32> -> vector<2x64xf32>
    %c0_3 = arith.constant 0 : index
    %c0_4 = arith.constant 0 : index
    %4 = vector.load %arg3[%c0_3, %c0_4] : memref<1x64xf32, #tpu.memory_space<vmem>>, vector<1x64xf32>
    %5 = vector.broadcast %4 : vector<1x64xf32> to vector<2x64xf32>
    %6 = arith.addf %3, %5 : vector<2x64xf32>
    %cst_5 = arith.constant 5.000000e-01 : f32
    %7 = vector.broadcast %cst_5 : f32 to vector<2x64xf32>
    %8 = arith.mulf %7, %6 : vector<2x64xf32>
    %cst_6 = arith.constant 4.471500e-02 : f32
    %9 = vector.broadcast %cst_6 : f32 to vector<2x64xf32>
    %10 = arith.mulf %9, %6 : vector<2x64xf32>
    %11 = arith.mulf %10, %6 : vector<2x64xf32>
    %12 = arith.mulf %11, %6 : vector<2x64xf32>
    %13 = arith.addf %6, %12 : vector<2x64xf32>
    %cst_7 = arith.constant 0.797884583 : f32
    %14 = vector.broadcast %cst_7 : f32 to vector<2x64xf32>
    %15 = arith.mulf %14, %13 : vector<2x64xf32>
    %16 = math.tanh %15 : vector<2x64xf32>
    %cst_8 = arith.constant 1.000000e+00 : f32
    %17 = vector.broadcast %cst_8 : f32 to vector<2x64xf32>
    %18 = arith.addf %17, %16 : vector<2x64xf32>
    %19 = arith.mulf %8, %18 : vector<2x64xf32>
    %20 = arith.truncf %19 : vector<2x64xf32> to vector<2x64xbf16>
    %c0_9 = arith.constant 0 : index
    %c0_10 = arith.constant 0 : index
    %21 = vector.load %arg4[%c0_9, %c0_10] : memref<64x32xbf16, #tpu.memory_space<vmem>>, vector<64x32xbf16>
    %cst_11 = arith.constant dense<0.000000e+00> : vector<2x32xf32>
    %22 = tpu.matmul %20, %21, %cst_11 {dimension_numbers = #tpu.dot_dimension_numbers<[1], [0], [0], [1], [0, 0, 1, 1], [], []>} : vector<2x64xbf16>, vector<64x32xbf16>, vector<2x32xf32> -> vector<2x32xf32>
    %c0_12 = arith.constant 0 : index
    %c0_13 = arith.constant 0 : index
    %23 = vector.load %arg5[%c0_12, %c0_13] : memref<1x32xf32, #tpu.memory_space<vmem>>, vector<1x32xf32>
    %24 = vector.broadcast %23 : vector<1x32xf32> to vector<2x32xf32>
    %25 = arith.addf %22, %24 : vector<2x32xf32>
    %cst_14 = arith.constant 5.000000e-01 : f32
    %26 = vector.broadcast %cst_14 : f32 to vector<2x32xf32>
    %27 = arith.mulf %26, %25 : vector<2x32xf32>
    %cst_15 = arith.constant 4.471500e-02 : f32
    %28 = vector.broadcast %cst_15 : f32 to vector<2x32xf32>
    %29 = arith.mulf %28, %25 : vector<2x32xf32>
    %30 = arith.mulf %29, %25 : vector<2x32xf32>
    %31 = arith.mulf %30, %25 : vector<2x32xf32>
    %32 = arith.addf %25, %31 : vector<2x32xf32>
    %cst_16 = arith.constant 0.797884583 : f32
    %33 = vector.broadcast %cst_16 : f32 to vector<2x32xf32>
    %34 = arith.mulf %33, %32 : vector<2x32xf32>
    %35 = math.tanh %34 : vector<2x32xf32>
    %cst_17 = arith.constant 1.000000e+00 : f32
    %36 = vector.broadcast %cst_17 : f32 to vector<2x32xf32>
    %37 = arith.addf %36, %35 : vector<2x32xf32>
    %38 = arith.mulf %27, %37 : vector<2x32xf32>
    %39 = arith.truncf %38 : vector<2x32xf32> to vector<2x32xbf16>
    %c0_18 = arith.constant 0 : index
    %c0_19 = arith.constant 0 : index
    %40 = vector.load %arg6[%c0_18, %c0_19] : memref<32x96xbf16, #tpu.memory_space<vmem>>, vector<32x96xbf16>
    %cst_20 = arith.constant dense<0.000000e+00> : vector<2x96xf32>
    %41 = tpu.matmul %39, %40, %cst_20 {dimension_numbers = #tpu.dot_dimension_numbers<[1], [0], [0], [1], [0, 0, 1, 1], [], []>} : vector<2x32xbf16>, vector<32x96xbf16>, vector<2x96xf32> -> vector<2x96xf32>
    %c0_21 = arith.constant 0 : index
    %c0_22 = arith.constant 0 : index
    %42 = vector.load %arg7[%c0_21, %c0_22] : memref<1x96xf32, #tpu.memory_space<vmem>>, vector<1x96xf32>
    %43 = vector.broadcast %42 : vector<1x96xf32> to vector<2x96xf32>
    %44 = arith.addf %41, %43 : vector<2x96xf32>
    %45 = vector.extract_strided_slice %44 {offsets = [0, 0], sizes = [2, 16], strides = [1, 1]} : vector<2x96xf32> to vector<2x16xf32>
    %46 = vector.extract_strided_slice %44 {offsets = [0, 16], sizes = [2, 16], strides = [1, 1]} : vector<2x96xf32> to vector<2x16xf32>
    %47 = vector.extract_strided_slice %44 {offsets = [0, 32], sizes = [2, 16], strides = [1, 1]} : vector<2x96xf32> to vector<2x16xf32>
    %48 = vector.extract_strided_slice %44 {offsets = [0, 48], sizes = [2, 16], strides = [1, 1]} : vector<2x96xf32> to vector<2x16xf32>
    %49 = vector.extract_strided_slice %44 {offsets = [0, 64], sizes = [2, 16], strides = [1, 1]} : vector<2x96xf32> to vector<2x16xf32>
    %50 = vector.extract_strided_slice %44 {offsets = [0, 80], sizes = [2, 16], strides = [1, 1]} : vector<2x96xf32> to vector<2x16xf32>
    %cst_23 = arith.constant 1.000000e+00 : f32
    %51 = vector.broadcast %cst_23 : f32 to vector<2x16xf32>
    %52 = arith.addf %51, %46 : vector<2x16xf32>
    %53 = arith.mulf %52, %45 : vector<2x16xf32>
    %54 = arith.mulf %49, %48 : vector<2x16xf32>
    %55 = arith.subf %53, %54 : vector<2x16xf32>
    %56 = arith.mulf %52, %48 : vector<2x16xf32>
    %57 = arith.mulf %49, %45 : vector<2x16xf32>
    %58 = arith.addf %56, %57 : vector<2x16xf32>
    %59 = tpu.concatenate %55, %58, %47, %50 in 1 : vector<2x16xf32>, vector<2x16xf32>, vector<2x16xf32>, vector<2x16xf32> -> vector<2x64xf32>
    %60 = vector.shape_cast %59 : vector<2x64xf32> to vector<2x1x64xf32>
    %61 = vector.shape_cast %60 : vector<2x1x64xf32> to vector<2x1x64xf32>
    %62 = vector.broadcast %61 : vector<2x1x64xf32> to vector<2x8x64xf32>
    %c0_24 = arith.constant 0 : index
    %c0_25 = arith.constant 0 : index
    %c0_26 = arith.constant 0 : index
    %63 = vector.load %arg14[%c0_24, %c0_25, %c0_26] : memref<2x8x64xf32, #tpu.memory_space<vmem>>, vector<2x8x64xf32>
    tpu.vector_store %arg14[%c0_24, %c0_25, %c0_26], %62 {strides = array<i32>} : memref<2x8x64xf32, #tpu.memory_space<vmem>>, vector<2x8x64xf32>,
    %64 = arith.truncf %38 : vector<2x32xf32> to vector<2x32xbf16>
    %c0_27 = arith.constant 0 : index
    %c0_28 = arith.constant 0 : index
    %65 = vector.load %arg8[%c0_27, %c0_28] : memref<32x48xbf16, #tpu.memory_space<vmem>>, vector<32x48xbf16>
    %cst_29 = arith.constant dense<0.000000e+00> : vector<2x48xf32>
    %66 = tpu.matmul %64, %65, %cst_29 {dimension_numbers = #tpu.dot_dimension_numbers<[1], [0], [0], [1], [0, 0, 1, 1], [], []>} : vector<2x32xbf16>, vector<32x48xbf16>, vector<2x48xf32> -> vector<2x48xf32>
    %c0_30 = arith.constant 0 : index
    %c0_31 = arith.constant 0 : index
    %67 = vector.load %arg9[%c0_30, %c0_31] : memref<1x48xf32, #tpu.memory_space<vmem>>, vector<1x48xf32>
    %68 = vector.broadcast %67 : vector<1x48xf32> to vector<2x48xf32>
    %69 = arith.addf %66, %68 : vector<2x48xf32>
    %70 = vector.extract_strided_slice %69 {offsets = [0, 0], sizes = [2, 8], strides = [1, 1]} : vector<2x48xf32> to vector<2x8xf32>
    %71 = vector.extract_strided_slice %69 {offsets = [0, 8], sizes = [2, 8], strides = [1, 1]} : vector<2x48xf32> to vector<2x8xf32>
    %72 = vector.extract_strided_slice %69 {offsets = [0, 16], sizes = [2, 8], strides = [1, 1]} : vector<2x48xf32> to vector<2x8xf32>
    %73 = vector.extract_strided_slice %69 {offsets = [0, 24], sizes = [2, 8], strides = [1, 1]} : vector<2x48xf32> to vector<2x8xf32>
    %74 = vector.extract_strided_slice %69 {offsets = [0, 32], sizes = [2, 8], strides = [1, 1]} : vector<2x48xf32> to vector<2x8xf32>
    %75 = vector.extract_strided_slice %69 {offsets = [0, 40], sizes = [2, 8], strides = [1, 1]} : vector<2x48xf32> to vector<2x8xf32>
    %cst_32 = arith.constant 1.000000e+00 : f32
    %76 = vector.broadcast %cst_32 : f32 to vector<2x8xf32>
    %77 = arith.addf %76, %71 : vector<2x8xf32>
    %78 = arith.mulf %77, %70 : vector<2x8xf32>
    %79 = arith.mulf %74, %73 : vector<2x8xf32>
    %80 = arith.subf %78, %79 : vector<2x8xf32>
    %81 = arith.mulf %77, %73 : vector<2x8xf32>
    %82 = arith.mulf %74, %70 : vector<2x8xf32>
    %83 = arith.addf %81, %82 : vector<2x8xf32>
    %84 = tpu.concatenate %80, %83, %72, %75 in 1 : vector<2x8xf32>, vector<2x8xf32>, vector<2x8xf32>, vector<2x8xf32> -> vector<2x32xf32>
    %85 = vector.shape_cast %84 : vector<2x32xf32> to vector<2x1x32xf32>
    %86 = vector.shape_cast %85 : vector<2x1x32xf32> to vector<2x1x32xf32>
    %87 = vector.broadcast %86 : vector<2x1x32xf32> to vector<2x16x32xf32>
    %c0_33 = arith.constant 0 : index
    %c0_34 = arith.constant 0 : index
    %c0_35 = arith.constant 0 : index
    %88 = vector.load %arg15[%c0_33, %c0_34, %c0_35] : memref<2x16x32xf32, #tpu.memory_space<vmem>>, vector<2x16x32xf32>
    tpu.vector_store %arg15[%c0_33, %c0_34, %c0_35], %87 {strides = array<i32>} : memref<2x16x32xf32, #tpu.memory_space<vmem>>, vector<2x16x32xf32>,
    %89 = arith.truncf %38 : vector<2x32xf32> to vector<2x32xbf16>
    %c0_36 = arith.constant 0 : index
    %c0_37 = arith.constant 0 : index
    %90 = vector.load %arg10[%c0_36, %c0_37] : memref<32x96xbf16, #tpu.memory_space<vmem>>, vector<32x96xbf16>
    %cst_38 = arith.constant dense<0.000000e+00> : vector<2x96xf32>
    %91 = tpu.matmul %89, %90, %cst_38 {dimension_numbers = #tpu.dot_dimension_numbers<[1], [0], [0], [1], [0, 0, 1, 1], [], []>} : vector<2x32xbf16>, vector<32x96xbf16>, vector<2x96xf32> -> vector<2x96xf32>
    %c0_39 = arith.constant 0 : index
    %c0_40 = arith.constant 0 : index
    %92 = vector.load %arg11[%c0_39, %c0_40] : memref<1x96xf32, #tpu.memory_space<vmem>>, vector<1x96xf32>
    %93 = vector.broadcast %92 : vector<1x96xf32> to vector<2x96xf32>
    %94 = arith.addf %91, %93 : vector<2x96xf32>
    %95 = vector.extract_strided_slice %94 {offsets = [0, 0], sizes = [2, 16], strides = [1, 1]} : vector<2x96xf32> to vector<2x16xf32>
    %96 = vector.extract_strided_slice %94 {offsets = [0, 16], sizes = [2, 16], strides = [1, 1]} : vector<2x96xf32> to vector<2x16xf32>
    %97 = vector.extract_strided_slice %94 {offsets = [0, 32], sizes = [2, 16], strides = [1, 1]} : vector<2x96xf32> to vector<2x16xf32>
    %98 = vector.extract_strided_slice %94 {offsets = [0, 48], sizes = [2, 16], strides = [1, 1]} : vector<2x96xf32> to vector<2x16xf32>
    %99 = vector.extract_strided_slice %94 {offsets = [0, 64], sizes = [2, 16], strides = [1, 1]} : vector<2x96xf32> to vector<2x16xf32>
    %100 = vector.extract_strided_slice %94 {offsets = [0, 80], sizes = [2, 16], strides = [1, 1]} : vector<2x96xf32> to vector<2x16xf32>
    %cst_41 = arith.constant 1.000000e+00 : f32
    %101 = vector.broadcast %cst_41 : f32 to vector<2x16xf32>
    %102 = arith.addf %101, %96 : vector<2x16xf32>
    %103 = arith.mulf %102, %95 : vector<2x16xf32>
    %104 = arith.mulf %99, %98 : vector<2x16xf32>
    %105 = arith.subf %103, %104 : vector<2x16xf32>
    %106 = arith.mulf %102, %98 : vector<2x16xf32>
    %107 = arith.mulf %99, %95 : vector<2x16xf32>
    %108 = arith.addf %106, %107 : vector<2x16xf32>
    %109 = tpu.concatenate %105, %108, %97, %100 in 1 : vector<2x16xf32>, vector<2x16xf32>, vector<2x16xf32>, vector<2x16xf32> -> vector<2x64xf32>
    %110 = vector.shape_cast %109 : vector<2x64xf32> to vector<2x1x64xf32>
    %111 = vector.shape_cast %110 : vector<2x1x64xf32> to vector<2x1x64xf32>
    %112 = vector.broadcast %111 : vector<2x1x64xf32> to vector<2x8x64xf32>
    %c0_42 = arith.constant 0 : index
    %c0_43 = arith.constant 0 : index
    %c0_44 = arith.constant 0 : index
    %113 = vector.load %arg16[%c0_42, %c0_43, %c0_44] : memref<2x8x64xf32, #tpu.memory_space<vmem>>, vector<2x8x64xf32>
    tpu.vector_store %arg16[%c0_42, %c0_43, %c0_44], %112 {strides = array<i32>} : memref<2x8x64xf32, #tpu.memory_space<vmem>>, vector<2x8x64xf32>,
    %114 = arith.truncf %38 : vector<2x32xf32> to vector<2x32xbf16>
    %c0_45 = arith.constant 0 : index
    %c0_46 = arith.constant 0 : index
    %115 = vector.load %arg12[%c0_45, %c0_46] : memref<32x48xbf16, #tpu.memory_space<vmem>>, vector<32x48xbf16>
    %cst_47 = arith.constant dense<0.000000e+00> : vector<2x48xf32>
    %116 = tpu.matmul %114, %115, %cst_47 {dimension_numbers = #tpu.dot_dimension_numbers<[1], [0], [0], [1], [0, 0, 1, 1], [], []>} : vector<2x32xbf16>, vector<32x48xbf16>, vector<2x48xf32> -> vector<2x48xf32>
    %c0_48 = arith.constant 0 : index
    %c0_49 = arith.constant 0 : index
    %117 = vector.load %arg13[%c0_48, %c0_49] : memref<1x48xf32, #tpu.memory_space<vmem>>, vector<1x48xf32>
    %118 = vector.broadcast %117 : vector<1x48xf32> to vector<2x48xf32>
    %119 = arith.addf %116, %118 : vector<2x48xf32>
    %120 = vector.extract_strided_slice %119 {offsets = [0, 0], sizes = [2, 8], strides = [1, 1]} : vector<2x48xf32> to vector<2x8xf32>
    %121 = vector.extract_strided_slice %119 {offsets = [0, 8], sizes = [2, 8], strides = [1, 1]} : vector<2x48xf32> to vector<2x8xf32>
    %122 = vector.extract_strided_slice %119 {offsets = [0, 16], sizes = [2, 8], strides = [1, 1]} : vector<2x48xf32> to vector<2x8xf32>
    %123 = vector.extract_strided_slice %119 {offsets = [0, 24], sizes = [2, 8], strides = [1, 1]} : vector<2x48xf32> to vector<2x8xf32>
    %124 = vector.extract_strided_slice %119 {offsets = [0, 32], sizes = [2, 8], strides = [1, 1]} : vector<2x48xf32> to vector<2x8xf32>
    %125 = vector.extract_strided_slice %119 {offsets = [0, 40], sizes = [2, 8], strides = [1, 1]} : vector<2x48xf32> to vector<2x8xf32>
    %cst_50 = arith.constant 1.000000e+00 : f32
    %126 = vector.broadcast %cst_50 : f32 to vector<2x8xf32>
    %127 = arith.addf %126, %121 : vector<2x8xf32>
    %128 = arith.mulf %127, %120 : vector<2x8xf32>
    %129 = arith.mulf %124, %123 : vector<2x8xf32>
    %130 = arith.subf %128, %129 : vector<2x8xf32>
    %131 = arith.mulf %127, %123 : vector<2x8xf32>
    %132 = arith.mulf %124, %120 : vector<2x8xf32>
    %133 = arith.addf %131, %132 : vector<2x8xf32>
    %134 = tpu.concatenate %130, %133, %122, %125 in 1 : vector<2x8xf32>, vector<2x8xf32>, vector<2x8xf32>, vector<2x8xf32> -> vector<2x32xf32>
    %135 = vector.shape_cast %134 : vector<2x32xf32> to vector<2x1x32xf32>
    %136 = vector.shape_cast %135 : vector<2x1x32xf32> to vector<2x1x32xf32>
    %137 = vector.broadcast %136 : vector<2x1x32xf32> to vector<2x16x32xf32>
    %c0_51 = arith.constant 0 : index
    %c0_52 = arith.constant 0 : index
    %c0_53 = arith.constant 0 : index
    %138 = vector.load %arg17[%c0_51, %c0_52, %c0_53] : memref<2x16x32xf32, #tpu.memory_space<vmem>>, vector<2x16x32xf32>
    tpu.vector_store %arg17[%c0_51, %c0_52, %c0_53], %137 {strides = array<i32>} : memref<2x16x32xf32, #tpu.memory_space<vmem>>, vector<2x16x32xf32>,
    return
  }
  func.func @transform_0(%arg0: i32) -> (i32, i32) {
    %c0_i32 = arith.constant 0 : i32
    %c0_i32_0 = arith.constant 0 : i32
    %c0_i32_1 = arith.constant 0 : i32
    return %c0_i32, %c0_i32_0 : i32, i32
  }
  func.func @transform_1(%arg0: i32) -> (i32, i32) {
    %c0_i32 = arith.constant 0 : i32
    %c0_i32_0 = arith.constant 0 : i32
    %c0_i32_1 = arith.constant 0 : i32
    return %c0_i32, %c0_i32_0 : i32, i32
  }
  func.func @transform_2(%arg0: i32) -> (i32, i32) {
    %c0_i32 = arith.constant 0 : i32
    %c0_i32_0 = arith.constant 0 : i32
    %c0_i32_1 = arith.constant 0 : i32
    return %c0_i32, %c0_i32_0 : i32, i32
  }
  func.func @transform_3(%arg0: i32) -> (i32, i32) {
    %c0_i32 = arith.constant 0 : i32
    %c0_i32_0 = arith.constant 0 : i32
    %c0_i32_1 = arith.constant 0 : i32
    return %c0_i32, %c0_i32_0 : i32, i32
  }
  func.func @transform_4(%arg0: i32) -> (i32, i32) {
    %c0_i32 = arith.constant 0 : i32
    %c0_i32_0 = arith.constant 0 : i32
    %c0_i32_1 = arith.constant 0 : i32
    return %c0_i32, %c0_i32_0 : i32, i32
  }
  func.func @transform_5(%arg0: i32) -> (i32, i32) {
    %c0_i32 = arith.constant 0 : i32
    %c0_i32_0 = arith.constant 0 : i32
    %c0_i32_1 = arith.constant 0 : i32
    return %c0_i32, %c0_i32_0 : i32, i32
  }
  func.func @transform_6(%arg0: i32) -> (i32, i32) {
    %c0_i32 = arith.constant 0 : i32
    %c0_i32_0 = arith.constant 0 : i32
    %c0_i32_1 = arith.constant 0 : i32
    return %c0_i32, %c0_i32_0 : i32, i32
  }
  func.func @transform_7(%arg0: i32) -> (i32, i32) {
    %c0_i32 = arith.constant 0 : i32
    %c0_i32_0 = arith.constant 0 : i32
    %c0_i32_1 = arith.constant 0 : i32
    return %c0_i32, %c0_i32_0 : i32, i32
  }
  func.func @transform_8(%arg0: i32) -> (i32, i32) {
    %c0_i32 = arith.constant 0 : i32
    %c0_i32_0 = arith.constant 0 : i32
    %c0_i32_1 = arith.constant 0 : i32
    return %c0_i32, %c0_i32_0 : i32, i32
  }
  func.func @transform_9(%arg0: i32) -> (i32, i32) {
    %c0_i32 = arith.constant 0 : i32
    %c0_i32_0 = arith.constant 0 : i32
    %c0_i32_1 = arith.constant 0 : i32
    return %c0_i32, %c0_i32_0 : i32, i32
  }
  func.func @transform_10(%arg0: i32) -> (i32, i32) {
    %c0_i32 = arith.constant 0 : i32
    %c0_i32_0 = arith.constant 0 : i32
    %c0_i32_1 = arith.constant 0 : i32
    return %c0_i32, %c0_i32_0 : i32, i32
  }
  func.func @transform_11(%arg0: i32) -> (i32, i32) {
    %c0_i32 = arith.constant 0 : i32
    %c0_i32_0 = arith.constant 0 : i32
    %c0_i32_1 = arith.constant 0 : i32
    return %c0_i32, %c0_i32_0 : i32, i32
  }
  func.func @transform_12(%arg0: i32) -> (i32, i32) {
    %c0_i32 = arith.constant 0 : i32
    %c0_i32_0 = arith.constant 0 : i32
    %c0_i32_1 = arith.constant 0 : i32
    return %c0_i32, %c0_i32_0 : i32, i32
  }
  func.func @transform_13(%arg0: i32) -> (i32, i32, i32) {
    %c0_i32 = arith.constant 0 : i32
    %c0_i32_0 = arith.constant 0 : i32
    %c0_i32_1 = arith.constant 0 : i32
    %c0_i32_2 = arith.constant 0 : i32
    return %c0_i32, %c0_i32_0, %c0_i32_1 : i32, i32, i32
  }
  func.func @transform_14(%arg0: i32) -> (i32, i32, i32) {
    %c0_i32 = arith.constant 0 : i32
    %c0_i32_0 = arith.constant 0 : i32
    %c0_i32_1 = arith.constant 0 : i32
    %c0_i32_2 = arith.constant 0 : i32
    return %c0_i32, %c0_i32_0, %c0_i32_1 : i32, i32, i32
  }
  func.func @transform_15(%arg0: i32) -> (i32, i32, i32) {
    %c0_i32 = arith.constant 0 : i32
    %c0_i32_0 = arith.constant 0 : i32
    %c0_i32_1 = arith.constant 0 : i32
    %c0_i32_2 = arith.constant 0 : i32
    return %c0_i32, %c0_i32_0, %c0_i32_1 : i32, i32, i32
  }
  func.func @transform_16(%arg0: i32) -> (i32, i32, i32) {
    %c0_i32 = arith.constant 0 : i32
    %c0_i32_0 = arith.constant 0 : i32
    %c0_i32_1 = arith.constant 0 : i32
    %c0_i32_2 = arith.constant 0 : i32
    return %c0_i32, %c0_i32_0, %c0_i32_1 : i32, i32, i32
  }
}

module attributes {stable_mosaic.version = 11 : i64} {
  func.func @_linear_block_kernel(%arg0: i32, %arg1: memref<32x16xf32, #tpu.memory_space<vmem>>, %arg2: memref<32x32xf32, #tpu.memory_space<vmem>>, %arg3: memref<16x32xbf16, #tpu.memory_space<vmem>>, %arg4: memref<1x32xf32, #tpu.memory_space<vmem>>, %arg5: memref<32x16xbf16, #tpu.memory_space<vmem>>, %arg6: memref<1x16xf32, #tpu.memory_space<vmem>>, %arg7: memref<32x16xf32, #tpu.memory_space<vmem>>) attributes {dimension_semantics = [#tpu.dimension_semantics<parallel>], iteration_bounds = array<i64: 1>, scalar_prefetch = 0 : i64, scratch_operands = 0 : i64, tpu.core_type = #tpu.core_type<tc>, window_params = [{transform_indices = @transform_0, window_bounds = array<i64: 32, 16>}, {transform_indices = @transform_1, window_bounds = array<i64: 32, 32>}, {pipeline_mode = #tpu.pipeline_mode<synchronous>, transform_indices = @transform_2, window_bounds = array<i64: 16, 32>}, {pipeline_mode = #tpu.pipeline_mode<synchronous>, transform_indices = @transform_3, window_bounds = array<i64: 1, 32>}, {pipeline_mode = #tpu.pipeline_mode<synchronous>, transform_indices = @transform_4, window_bounds = array<i64: 32, 16>}, {pipeline_mode = #tpu.pipeline_mode<synchronous>, transform_indices = @transform_5, window_bounds = array<i64: 1, 16>}, {transform_indices = @transform_6, window_bounds = array<i64: 32, 16>}]} {
    %c0 = arith.constant 0 : index
    %c0_0 = arith.constant 0 : index
    %0 = vector.load %arg1[%c0, %c0_0] : memref<32x16xf32, #tpu.memory_space<vmem>>, vector<32x16xf32>
    %c0_1 = arith.constant 0 : index
    %c0_2 = arith.constant 0 : index
    %1 = vector.load %arg2[%c0_1, %c0_2] : memref<32x32xf32, #tpu.memory_space<vmem>>, vector<32x32xf32>
    %2 = vector.extract_strided_slice %0 {offsets = [0, 0], sizes = [32, 8], strides = [1, 1]} : vector<32x16xf32> to vector<32x8xf32>
    %3 = vector.extract_strided_slice %0 {offsets = [0, 8], sizes = [32, 8], strides = [1, 1]} : vector<32x16xf32> to vector<32x8xf32>
    %4 = vector.extract_strided_slice %1 {offsets = [0, 0], sizes = [32, 8], strides = [1, 1]} : vector<32x32xf32> to vector<32x8xf32>
    %5 = vector.extract_strided_slice %1 {offsets = [0, 8], sizes = [32, 8], strides = [1, 1]} : vector<32x32xf32> to vector<32x8xf32>
    %6 = vector.extract_strided_slice %1 {offsets = [0, 16], sizes = [32, 8], strides = [1, 1]} : vector<32x32xf32> to vector<32x8xf32>
    %7 = vector.extract_strided_slice %1 {offsets = [0, 24], sizes = [32, 8], strides = [1, 1]} : vector<32x32xf32> to vector<32x8xf32>
    %8 = arith.mulf %2, %4 : vector<32x8xf32>
    %9 = arith.mulf %3, %5 : vector<32x8xf32>
    %10 = arith.subf %8, %9 : vector<32x8xf32>
    %11 = arith.mulf %2, %5 : vector<32x8xf32>
    %12 = arith.mulf %3, %4 : vector<32x8xf32>
    %13 = arith.addf %11, %12 : vector<32x8xf32>
    %14 = tpu.concatenate %10, %13 in 1 : vector<32x8xf32>, vector<32x8xf32> -> vector<32x16xf32>
    %15 = arith.truncf %14 : vector<32x16xf32> to vector<32x16xbf16>
    %c0_3 = arith.constant 0 : index
    %c0_4 = arith.constant 0 : index
    %16 = vector.load %arg3[%c0_3, %c0_4] : memref<16x32xbf16, #tpu.memory_space<vmem>>, vector<16x32xbf16>
    %cst = arith.constant dense<0.000000e+00> : vector<32x32xf32>
    %17 = tpu.matmul %15, %16, %cst {dimension_numbers = #tpu.dot_dimension_numbers<[1], [0], [0], [1], [0, 0, 1, 1], [], []>} : vector<32x16xbf16>, vector<16x32xbf16>, vector<32x32xf32> -> vector<32x32xf32>
    %c0_5 = arith.constant 0 : index
    %c0_6 = arith.constant 0 : index
    %18 = vector.load %arg4[%c0_5, %c0_6] : memref<1x32xf32, #tpu.memory_space<vmem>>, vector<1x32xf32>
    %19 = vector.broadcast %18 : vector<1x32xf32> to vector<32x32xf32>
    %20 = arith.addf %17, %19 : vector<32x32xf32>
    %cst_7 = arith.constant 5.000000e-01 : f32
    %21 = vector.broadcast %cst_7 : f32 to vector<32x32xf32>
    %22 = arith.mulf %21, %20 : vector<32x32xf32>
    %cst_8 = arith.constant 4.471500e-02 : f32
    %23 = vector.broadcast %cst_8 : f32 to vector<32x32xf32>
    %24 = arith.mulf %23, %20 : vector<32x32xf32>
    %25 = arith.mulf %24, %20 : vector<32x32xf32>
    %26 = arith.mulf %25, %20 : vector<32x32xf32>
    %27 = arith.addf %20, %26 : vector<32x32xf32>
    %cst_9 = arith.constant 0.797884583 : f32
    %28 = vector.broadcast %cst_9 : f32 to vector<32x32xf32>
    %29 = arith.mulf %28, %27 : vector<32x32xf32>
    %30 = math.tanh %29 : vector<32x32xf32>
    %cst_10 = arith.constant 1.000000e+00 : f32
    %31 = vector.broadcast %cst_10 : f32 to vector<32x32xf32>
    %32 = arith.addf %31, %30 : vector<32x32xf32>
    %33 = arith.mulf %22, %32 : vector<32x32xf32>
    %34 = arith.truncf %33 : vector<32x32xf32> to vector<32x32xbf16>
    %c0_11 = arith.constant 0 : index
    %c0_12 = arith.constant 0 : index
    %35 = vector.load %arg5[%c0_11, %c0_12] : memref<32x16xbf16, #tpu.memory_space<vmem>>, vector<32x16xbf16>
    %cst_13 = arith.constant dense<0.000000e+00> : vector<32x16xf32>
    %36 = tpu.matmul %34, %35, %cst_13 {dimension_numbers = #tpu.dot_dimension_numbers<[1], [0], [0], [1], [0, 0, 1, 1], [], []>} : vector<32x32xbf16>, vector<32x16xbf16>, vector<32x16xf32> -> vector<32x16xf32>
    %c0_14 = arith.constant 0 : index
    %c0_15 = arith.constant 0 : index
    %37 = vector.load %arg6[%c0_14, %c0_15] : memref<1x16xf32, #tpu.memory_space<vmem>>, vector<1x16xf32>
    %38 = vector.broadcast %37 : vector<1x16xf32> to vector<32x16xf32>
    %39 = arith.addf %36, %38 : vector<32x16xf32>
    %40 = vector.extract_strided_slice %39 {offsets = [0, 0], sizes = [32, 8], strides = [1, 1]} : vector<32x16xf32> to vector<32x8xf32>
    %41 = vector.extract_strided_slice %39 {offsets = [0, 8], sizes = [32, 8], strides = [1, 1]} : vector<32x16xf32> to vector<32x8xf32>
    %42 = arith.mulf %6, %40 : vector<32x8xf32>
    %43 = arith.mulf %7, %41 : vector<32x8xf32>
    %44 = arith.subf %42, %43 : vector<32x8xf32>
    %45 = arith.mulf %6, %41 : vector<32x8xf32>
    %46 = arith.mulf %7, %40 : vector<32x8xf32>
    %47 = arith.addf %45, %46 : vector<32x8xf32>
    %48 = arith.addf %44, %2 : vector<32x8xf32>
    %49 = arith.addf %47, %3 : vector<32x8xf32>
    %c0_16 = arith.constant 0 : index
    %c0_17 = arith.constant 0 : index
    %50 = vector.load %arg7[%c0_16, %c0_17] : memref<32x16xf32, #tpu.memory_space<vmem>>, vector<32x8xf32>
    tpu.vector_store %arg7[%c0_16, %c0_17], %48 {strides = array<i32>} : memref<32x16xf32, #tpu.memory_space<vmem>>, vector<32x8xf32>,
    %c0_18 = arith.constant 0 : index
    %c8 = arith.constant 8 : index
    %51 = vector.load %arg7[%c0_18, %c8] : memref<32x16xf32, #tpu.memory_space<vmem>>, vector<32x8xf32>
    tpu.vector_store %arg7[%c0_18, %c8], %49 {strides = array<i32>} : memref<32x16xf32, #tpu.memory_space<vmem>>, vector<32x8xf32>,
    return
  }
  func.func @transform_0(%arg0: i32) -> (i32, i32) {
    %c0_i32 = arith.constant 0 : i32
    %c0_i32_0 = arith.constant 0 : i32
    return %arg0, %c0_i32 : i32, i32
  }
  func.func @transform_1(%arg0: i32) -> (i32, i32) {
    %c0_i32 = arith.constant 0 : i32
    %c0_i32_0 = arith.constant 0 : i32
    return %arg0, %c0_i32 : i32, i32
  }
  func.func @transform_2(%arg0: i32) -> (i32, i32) {
    %c0_i32 = arith.constant 0 : i32
    %c0_i32_0 = arith.constant 0 : i32
    %c0_i32_1 = arith.constant 0 : i32
    return %c0_i32, %c0_i32_0 : i32, i32
  }
  func.func @transform_3(%arg0: i32) -> (i32, i32) {
    %c0_i32 = arith.constant 0 : i32
    %c0_i32_0 = arith.constant 0 : i32
    %c0_i32_1 = arith.constant 0 : i32
    return %c0_i32, %c0_i32_0 : i32, i32
  }
  func.func @transform_4(%arg0: i32) -> (i32, i32) {
    %c0_i32 = arith.constant 0 : i32
    %c0_i32_0 = arith.constant 0 : i32
    %c0_i32_1 = arith.constant 0 : i32
    return %c0_i32, %c0_i32_0 : i32, i32
  }
  func.func @transform_5(%arg0: i32) -> (i32, i32) {
    %c0_i32 = arith.constant 0 : i32
    %c0_i32_0 = arith.constant 0 : i32
    %c0_i32_1 = arith.constant 0 : i32
    return %c0_i32, %c0_i32_0 : i32, i32
  }
  func.func @transform_6(%arg0: i32) -> (i32, i32) {
    %c0_i32 = arith.constant 0 : i32
    %c0_i32_0 = arith.constant 0 : i32
    return %arg0, %c0_i32 : i32, i32
  }
}

</mosaic_0001>

<bundles_post_ra>
// kernel: custom-call
= control target key start
LH: loop header
LB: loop body
LE: loop exit
PB: predicated region body
PF: predicated region fallthrough
CT: control target
= control target key end

     0   :  { %2 = vsyncpa [#allocation0], 0  ;;  %s47_s0 = inlined_call_operand.hbm [shape: c64[2,8,16], index: 0, kind: input, shape index: {}]   ;;  %s48_s1 = inlined_call_operand.vmem [shape: f32[2,8,16], index: 1, kind: output, shape index: {}]  }
   0x1   :  { %s3_s8 = sshll.u32 %s48_s1, 4  ;;  %s4_s8 = int_to_ptr.vmem [resolvable:$true] %s3_s8 }
   0x2   :  { %s17_s9 = scalar_lea.vmem %s4_s8, 256  ;;  %p22_p1 = scmp.lt.s32.totalorder %s4_s8, %s4_s8 }
   0x3   :  { %p18_p0 = scmp.ne.s32.totalorder %s4_s8, %s17_s9  ;;  %p23_p2 = scmp.lt.s32.totalorder %s17_s9, %s17_s9 }
   0x5   :  { %p24_p3 = por %p23_p2, %p22_p1 }
   0x7   :  { %p25_p4 = pnand %p24_p3, %p18_p0 }
   0x9   :  { %28 = shalt.err (!%p25_p4)  }
   0xa   :  { %6 = dma.hbm_to_vmem [thread:$0]  %s47_s0, 256, %s4_s8, [#allocation0] }
   0xb   :  { %29 = dma.done.wait [#allocation0], 256  }
   0xc   :  { %30 = vsyncadd [#allocation0], 4294967040 }
   0xd   :  { %8 = vsyncpa [#allocation0], 1 }

// kernel: custom-call.1
= control target key start
LH: loop header
LB: loop body
LE: loop exit
PB: predicated region body
PF: predicated region fallthrough
CT: control target
= control target key end

     0   :  { %s51_s0 = inlined_call_operand.hbm [shape: c64[2,8,16], index: 0, kind: input, shape index: {}]   ;;  %s52_s1 = inlined_call_operand.vmem [shape: f32[2,8,16], index: 1, kind: output, shape index: {}]  }
   0x1   :  { %s2_s8 = scalar_lea.hbm %s51_s0, 256 }
   0x2   :  { %3 = vsyncpa [#allocation0], 0  ;;  %s4_s11 = sshll.u32 %s52_s1, 4  ;;  %s5_s11 = int_to_ptr.vmem [resolvable:$true] %s4_s11 }
   0x3   :  { %s20_s12 = scalar_lea.vmem %s5_s11, 256  ;;  %p25_p1 = scmp.lt.s32.totalorder %s5_s11, %s5_s11 }
   0x4   :  { %p21_p0 = scmp.ne.s32.totalorder %s5_s11, %s20_s12  ;;  %p26_p2 = scmp.lt.s32.totalorder %s20_s12, %s20_s12 }
   0x6   :  { %p27_p3 = por %p26_p2, %p25_p1 }
   0x8   :  { %p28_p4 = pnand %p27_p3, %p21_p0 }
   0xa   :  { %31 = shalt.err (!%p28_p4)  }
   0xb   :  { %7 = dma.hbm_to_vmem [thread:$0]  %s2_s8, 256, %s5_s11, [#allocation0] }
   0xc   :  { %33 = dma.done.wait [#allocation0], 256  }
   0xd   :  { %34 = vsyncadd [#allocation0], 4294967040 }
   0xe   :  { %9 = vsyncpa [#allocation0], 1 }

// kernel: custom-call.2
= control target key start
LH: loop header
LB: loop body
LE: loop exit
PB: predicated region body
PF: predicated region fallthrough
CT: control target
= control target key end

     0   :  { %s92_s0 = inlined_call_operand.vmem [shape: f32[2,8,16], index: 0, kind: input, shape index: {}]   ;;  %s93_s1 = inlined_call_operand.vmem [shape: f32[2,8,16], index: 1, kind: input, shape index: {}]   ;;  %s94_s2 = inlined_call_operand.hbm [shape: c64[2,8,16], index: 2, kind: output, shape index: {}]  }
   0x1   :  { %s3_s11 = scalar_lea.hbm %s94_s2, 256 }
   0x2   :  { %4 = vsyncpa [#allocation0], 0  ;;  %s5_s14 = sshll.u32 %s92_s0, 4  ;;  %s6_s14 = int_to_ptr.vmem [resolvable:$true] %s5_s14 }
   0x3   :  { %s18_s15 = scalar_lea.vmem %s6_s14, 256  ;;  %p23_p1 = scmp.lt.s32.totalorder %s6_s14, %s6_s14 }
   0x4   :  { %p19_p0 = scmp.ne.s32.totalorder %s6_s14, %s18_s15  ;;  %p24_p2 = scmp.lt.s32.totalorder %s18_s15, %s18_s15 }
   0x6   :  { %p25_p3 = por %p24_p2, %p23_p1 }
   0x8   :  { %p26_p4 = pnand %p25_p3, %p19_p0 }
   0xa   :  { %29 = shalt.err (!%p26_p4)  }
   0xb   :  { %8 = dma.vmem_to_hbm [thread:$0]  %s6_s14, 256, %s94_s2, [#allocation0] }
   0xc   :  { %61 = dma.done.wait [#allocation0], 256  }
   0xd   :  { %62 = vsyncadd [#allocation0], 4294967040 }
   0xe   :  { %10 = vsyncpa [#allocation0], 1 }
   0xf   :  { %11 = vsyncpa [#allocation1], 0  ;;  %s12_s0 = sshll.u32 %s93_s1, 4  ;;  %s13_s0 = int_to_ptr.vmem [resolvable:$true] %s12_s0 }
  0x10   :  { %s38_s20 = scalar_lea.vmem %s13_s0, 256  ;;  %p43_p6 = scmp.lt.s32.totalorder %s13_s0, %s13_s0 }
  0x11   :  { %p39_p5 = scmp.ne.s32.totalorder %s13_s0, %s38_s20  ;;  %p44_p7 = scmp.lt.s32.totalorder %s38_s20, %s38_s20 }
  0x13   :  { %p45_p8 = por %p44_p7, %p43_p6 }
  0x15   :  { %p46_p9 = pnand %p45_p8, %p39_p5 }
  0x17   :  { %49 = shalt.err (!%p46_p9)  }
  0x18   :  { %15 = dma.vmem_to_hbm [thread:$0]  %s13_s0, 256, %s3_s11, [#allocation1] }
  0x19   :  { %63 = dma.done.wait [#allocation1], 256  }
  0x1a   :  { %64 = vsyncadd [#allocation1], 4294967040 }
  0x1b   :  { %17 = vsyncpa [#allocation1], 1 }

// kernel: _lambda_.7
= control target key start
LH: loop header
LB: loop body
LE: loop exit
PB: predicated region body
PF: predicated region fallthrough
CT: control target
= control target key end

     0   :  { %s552_s25 = smov 8   ;;  %s553_s30 = smov 120   ;;  %vm128_vm0 = vcmask 64512   ;;  %vm150_vm1 = vcmask 130048   ;;  %vm267_vm2 = vcmask 261120   ;;  %vm487_vm3 = vcmask 130112   ;;  %s761_s1 = inlined_call_operand.vmem [shape: f32[32,32], index: 1, kind: input, shape index: {}]   ;;  %s762_s0 = inlined_call_operand.vmem [shape: f32[32,16], index: 0, kind: input, shape index: {}]   ;;  %s763_s2 = inlined_call_operand.vmem [shape: bf16[16,32], index: 2, kind: input, shape index: {}]   ;;  %s764_s4 = inlined_call_operand.vmem [shape: bf16[32,16], index: 4, kind: input, shape index: {}]   ;;  %s765_s3 = inlined_call_operand.vmem [shape: f32[1,32], index: 3, kind: input, shape index: {}]   ;;  %s766_s5 = inlined_call_operand.vmem [shape: f32[1,16], index: 5, kind: input, shape index: {}]   ;;  %s767_s6 = inlined_call_operand.vmem [shape: f32[32,16], index: 6, kind: output, shape index: {}]  }
   0x1   :  { %v595_v0 = vld [vmem:[%s761_s1] sm:$0xff]  ;;  %v600_v1 = vld [vmem:[%s761_s1 + $0x10] sm:$0xff]  ;;  %v609_v2 = vld [vmem:[%s761_s1 + $0x8] sm:$0xff]  ;;  %s554_s20 = smov 16   ;;  %s555_s21 = smov 24  }
   0x2   :  { %76 = vrot.lane.b32.xlu0 %v595_v0, %s552_s25  ;;  %80 = vrot.lane.b32.xlu1 %v600_v1, %s552_s25  ;;  %v614_v3 = vld [vmem:[%s761_s1 + $0x18] sm:$0xff]  ;;  %v631_v4 = vld [vmem:[%s762_s0] sm:$0xff] }
   0x3   :  { %v636_v7 = vld [vmem:[%s762_s0 + $0x10] sm:$0xff]  ;;  %v642_v9 = vld [vmem:[%s762_s0 + $0x8] sm:$0xff]  ;;  %v649_v13 = vld [vmem:[%s762_s0 + $0x18] sm:$0xff]  ;;  %v32_v16 = vmul.f32 %v595_v0, %v631_v4 }
   0x4   :  { %v33_v17 = vmul.f32 %v609_v2, %v642_v9  ;;  %v34_v18 = vmul.f32 %v600_v1, %v636_v7  ;;  %v35_v19 = vmul.f32 %v614_v3, %v649_v13  ;;  %v541_v24 = vld [vmem:[%s763_s2] sm:$0xff]   ;;  %v542_v59 = vld [vmem:[%s764_s4 + $0x8] sm:$0xff]  }
   0x5   :  { %512 = vmatprep.subr.bf16.mxu0 %v541_v24  ;;  %v543_v60 = vld [vmem:[%s764_s4] sm:$0xff]   ;;  %518 = vmatprep.subr.bf16.mxu1 %v542_v59 }
   0x6   :  { %78 = vrot.lane.b32.xlu0 %v609_v2, %s552_s25  ;;  %82 = vrot.lane.b32.xlu1 %v614_v3, %s552_s25  ;;  %v496_v61 = vld [vmem:[%s765_s3] ss:$0 sm:$0xff] }
   0x7   :  { %513 = vmatpush3.bf16.msra.mxu0 %v541_v24  ;;  %519 = vmatpush3.bf16.msra.mxu1 %v542_v59 }
   0x8   :  { %520 = vmatprep.subr.bf16.mxu1 %v543_v60 }
   0xa   :  { %60 = vrot.lane.b32.xlu0 %v595_v0, %s553_s30  ;;  %62 = vrot.lane.b32.xlu1 %v609_v2, %s553_s30 }
   0xb   :  { %521 = vmatpush3.bf16.msra.mxu1 %v543_v60 }
   0xe   :  { %64 = vrot.lane.b32.xlu0 %v600_v1, %s553_s30  ;;  %66 = vrot.lane.b32.xlu1 %v614_v3, %s553_s30 }
  0x74   :  { %v77_v5 = vpop.permute.xlu0 %76  ;;  %v81_v6 = vpop.permute.xlu1 %80 }
  0x75   :  { %v88_v8 = vmul.f32 %v77_v5, %v631_v4  ;;  %v90_v10 = vmul.f32 %v81_v6, %v636_v7 }
  0x77   :  { %96 = vrot.lane.b32.xlu0 %v88_v8, %s553_s30 }
  0x78   :  { %v79_v11 = vpop.permute.xlu0 %78  ;;  %v83_v12 = vpop.permute.xlu1 %82 }
  0x79   :  { %v89_v14 = vmul.f32 %v79_v11, %v642_v9  ;;  %v91_v15 = vmul.f32 %v83_v12, %v649_v13 }
  0x7b   :  { %98 = vrot.lane.b32.xlu1 %v89_v14, %s553_s30  ;;  %100 = vrot.lane.b32.xlu0 %v90_v10, %s553_s30 }
  0x7c   :  { %v61_v20 = vpop.permute.xlu0 %60  ;;  %v63_v21 = vpop.permute.xlu1 %62 }
  0x7d   :  { %v72_v26 = vmul.f32 %v61_v20, %v631_v4  ;;  %v73_v27 = vmul.f32 %v63_v21, %v642_v9 }
  0x7f   :  { %102 = vrot.lane.b32.xlu1 %v91_v15, %s553_s30  ;;  %40 = vrot.lane.b32.xlu0 %v32_v16, %s553_s30 }
  0x80   :  { %v65_v22 = vpop.permute.xlu0 %64  ;;  %v67_v23 = vpop.permute.xlu1 %66 }
  0x81   :  { %v74_v32 = vmul.f32 %v65_v22, %v636_v7  ;;  %v75_v33 = vmul.f32 %v67_v23, %v649_v13 }
  0x83   :  { %42 = vrot.lane.b32.xlu1 %v33_v17, %s553_s30  ;;  %44 = vrot.lane.b32.xlu0 %v34_v18, %s553_s30 }
  0x87   :  { %46 = vrot.lane.b32.xlu1 %v35_v19, %s553_s30 }
  0xe9   :  { %v97_v25 = vpop.permute.xlu0 %96 }
  0xea   :  { %v108_v29 = vadd.f32 %v97_v25, %v72_v26 }
  0xed   :  { %v99_v28 = vpop.permute.xlu1 %98  ;;  %v101_v31 = vpop.permute.xlu0 %100 }
  0xee   :  { %v109_v30 = vadd.f32 %v99_v28, %v73_v27  ;;  %v110_v36 = vadd.f32 %v101_v31, %v74_v32 }
  0xf0   :  { %v531_v34 = vpack.i.bf16 %v109_v30, %v108_v29 }
  0xf1   :  { %v103_v35 = vpop.permute.xlu1 %102  ;;  %v41_v39 = vpop.permute.xlu0 %40 }
  0xf2   :  { %v111_v37 = vadd.f32 %v103_v35, %v75_v33  ;;  %532 = vrot.lane.b32.xlu0 %v531_v34, %s552_s25  ;;  %v52_v44 = vsub.f32 %v32_v16, %v41_v39 }
  0xf4   :  { %v536_v38 = vpack.i.bf16 %v111_v37, %v110_v36 }
  0xf5   :  { %v43_v40 = vpop.permute.xlu1 %42  ;;  %v45_v41 = vpop.permute.xlu0 %44 }
  0xf6   :  { %537 = vrot.lane.b32.xlu1 %v536_v38, %s552_s25  ;;  %v53_v45 = vsub.f32 %v33_v17, %v43_v40  ;;  %v54_v52 = vsub.f32 %v34_v18, %v45_v41 }
  0xf9   :  { %v47_v42 = vpop.permute.xlu1 %46 }
  0xfa   :  { %v55_v53 = vsub.f32 %v35_v19, %v47_v42 }
 0x164   :  { %v533_v43 = vpop.permute.xlu0 %532 }
 0x165   :  { %v535_v46 = vunpack.i.h.bf16 %v533_v43  ;;  %v534_v47 = vunpack.i.l.bf16 %v533_v43 }
 0x167   :  { %v129_v48 = vsel %vm128_vm0, %v52_v44, %v534_v47  ;;  %v130_v49 = vsel %vm128_vm0, %v53_v45, %v535_v46 }
 0x168   :  { %v538_v50 = vpop.permute.xlu1 %537  ;;  %v133_v51 = vpack.c.bf16 %v130_v49, %v129_v48 }
 0x169   :  { %v540_v54 = vunpack.i.h.bf16 %v538_v50  ;;  %v539_v55 = vunpack.i.l.bf16 %v538_v50 }
 0x16a   :  { %514 = vmatprep.mubr.msk.bf16.mxu0 %vm150_vm1, %v133_v51 }
 0x16b   :  { %v132_v56 = vsel %vm128_vm0, %v55_v53, %v540_v54  ;;  %v131_v57 = vsel %vm128_vm0, %v54_v52, %v539_v55  ;;  %v500_v52 = vld [vmem:[%s766_s5] ss:$0 sm:$0xff]  ;;  %s556_s5 = smov 112  }
 0x16c   :  { %v134_v58 = vpack.c.bf16 %v132_v56, %v131_v57 }
 0x16e   :  { %515 = vmatmul.mubr.msk.bf16.vlgmr.msra.gmra.mxu0 %vm150_vm1, %v134_v58 }
 0x22e   :  { %v516_v62 = vpop.f32.mrf.mxu0 }
 0x22f   :  { %v200_v63 = vadd.f32 %v516_v62, %v496_v61 }
 0x230   :  { %v191_v5 = vpop.f32.mrf.mxu0 }
 0x231   :  { %v212_v6 = vmul.f32 0.044715, %v200_v63  ;;  %v192_v8 = vadd.f32 %v496_v61, %v191_v5  ;;  %v208_v45 = vmul.f32 0.5, %v200_v63 }
 0x232   :  { %v517_v10 = vpop.f32.mrf.mxu0 }
 0x233   :  { %v216_v11 = vmul.f32 %v212_v6, %v200_v63  ;;  %v210_v12 = vmul.f32 0.044715, %v192_v8  ;;  %v203_v14 = vadd.f32 %v517_v10, %v496_v61  ;;  %v206_v42 = vmul.f32 0.5, %v192_v8 }
 0x234   :  { %v194_v15 = vpop.f32.mrf.mxu0 }
 0x235   :  { %v220_v16 = vmul.f32 %v216_v11, %v200_v63  ;;  %v214_v17 = vmul.f32 %v210_v12, %v192_v8  ;;  %v213_v18 = vmul.f32 0.044715, %v203_v14  ;;  %v195_v19 = vadd.f32 %v496_v61, %v194_v15 }
 0x236   :  { %v209_v40 = vmul.f32 0.5, %v203_v14 }
 0x237   :  { %v224_v20 = vadd.f32 %v220_v16, %v200_v63  ;;  %v217_v21 = vmul.f32 %v213_v18, %v203_v14  ;;  %v211_v22 = vmul.f32 0.044715, %v195_v19  ;;  %v218_v23 = vmul.f32 %v214_v17, %v192_v8 }
 0x238   :  { %v207_v43 = vmul.f32 0.5, %v195_v19 }
 0x239   :  { %v228_v24 = vmul.f32 0.7978846, %v224_v20  ;;  %v221_v25 = vmul.f32 %v217_v21, %v203_v14  ;;  %v215_v26 = vmul.f32 %v211_v22, %v195_v19  ;;  %v222_v27 = vadd.f32 %v218_v23, %v192_v8 }
 0x23b   :  { %v225_v28 = vadd.f32 %v221_v25, %v203_v14  ;;  %v219_v29 = vmul.f32 %v215_v26, %v195_v19  ;;  %v226_v30 = vmul.f32 0.7978846, %v222_v27  ;;  %544 = vtanh.f32 %v228_v24 }
 0x23d   :  { %v229_v31 = vmul.f32 0.7978846, %v225_v28  ;;  %v223_v32 = vadd.f32 %v219_v29, %v195_v19  ;;  %546 = vtanh.f32 %v226_v30 }
 0x23f   :  { %548 = vtanh.f32 %v229_v31  ;;  %v227_v33 = vmul.f32 0.7978846, %v223_v32 }
 0x241   :  { %550 = vtanh.f32 %v227_v33 }
 0x248   :  { %v545_v34 = vpop.eup %544 }
 0x249   :  { %v236_v41 = vadd.f32 1.0, %v545_v34 }
 0x24a   :  { %v547_v35 = vpop.eup %546 }
 0x24b   :  { %v234_v37 = vadd.f32 1.0, %v547_v35  ;;  %v240_v49 = vmul.f32 %v236_v41, %v208_v45 }
 0x24c   :  { %v549_v36 = vpop.eup %548 }
 0x24d   :  { %v237_v38 = vadd.f32 1.0, %v549_v36  ;;  %v238_v47 = vmul.f32 %v234_v37, %v206_v42 }
 0x24e   :  { %v551_v39 = vpop.eup %550 }
 0x24f   :  { %v235_v44 = vadd.f32 1.0, %v551_v39  ;;  %v241_v46 = vmul.f32 %v237_v38, %v209_v40 }
 0x251   :  { %v239_v48 = vmul.f32 %v235_v44, %v207_v43  ;;  %v243_v51 = vpack.c.bf16 %v241_v46, %v240_v49 }
 0x253   :  { %v242_v50 = vpack.c.bf16 %v239_v48, %v238_v47 }
 0x255   :  { %522 = vmatprep.mubr.msk.bf16.mxu1 %vm267_vm2, %v242_v50 }
 0x256   :  { %523 = vmatmul.mubr.msk.bf16.vlgmr.msra.gmra.mxu1 %vm267_vm2, %v243_v51 }
 0x316   :  { %v524_v53 = vpop.f32.mrf.mxu1 }
 0x317   :  { %v317_v54 = vadd.f32 %v524_v53, %v500_v52 }
 0x318   :  { %v308_v55 = vpop.f32.mrf.mxu1 }
 0x319   :  { %331 = vrot.lane.b32.xlu0 %v317_v54, %s554_s20  ;;  %v309_v57 = vadd.f32 %v500_v52, %v308_v55 }
 0x31a   :  { %v525_v56 = vpop.f32.mrf.mxu1 }
 0x31b   :  { %v320_v58 = vadd.f32 %v525_v56, %v500_v52 }
 0x31c   :  { %v311_v59 = vpop.f32.mrf.mxu1 }
 0x31d   :  { %333 = vrot.lane.b32.xlu1 %v320_v58, %s554_s20  ;;  %327 = vrot.lane.b32.xlu0 %v309_v57, %s554_s20  ;;  %v312_v60 = vadd.f32 %v500_v52, %v311_v59 }
 0x321   :  { %329 = vrot.lane.b32.xlu1 %v312_v60, %s554_s20  ;;  %379 = vrot.lane.b32.xlu0 %v309_v57, %s555_s21 }
 0x325   :  { %381 = vrot.lane.b32.xlu1 %v312_v60, %s555_s21  ;;  %383 = vrot.lane.b32.xlu0 %v317_v54, %s555_s21 }
 0x329   :  { %385 = vrot.lane.b32.xlu1 %v320_v58, %s555_s21  ;;  %363 = vrot.lane.b32.xlu0 %v309_v57, %s552_s25 }
 0x32d   :  { %369 = vrot.lane.b32.xlu1 %v320_v58, %s552_s25  ;;  %367 = vrot.lane.b32.xlu0 %v317_v54, %s552_s25 }
 0x331   :  { %421 = vrot.lane.b32.xlu1 %v642_v9, %s554_s20  ;;  %419 = vrot.lane.b32.xlu0 %v631_v4, %s554_s20 }
 0x335   :  { %425 = vrot.lane.b32.xlu1 %v649_v13, %s554_s20  ;;  %423 = vrot.lane.b32.xlu0 %v636_v7, %s554_s20 }
 0x339   :  { %437 = vrot.lane.b32.xlu1 %v642_v9, %s552_s25  ;;  %435 = vrot.lane.b32.xlu0 %v631_v4, %s552_s25 }
 0x33d   :  { %365 = vrot.lane.b32.xlu1 %v312_v60, %s552_s25 }
 0x38b   :  { %v332_v61 = vpop.permute.xlu0 %331 }
 0x38c   :  { %v341_v62 = vmul.f32 %v332_v61, %v600_v1 }
 0x38e   :  { %351 = vrot.lane.b32.xlu0 %v341_v62, %s553_s30 }
 0x38f   :  { %v334_v63 = vpop.permute.xlu1 %333  ;;  %v328_v5 = vpop.permute.xlu0 %327 }
 0x390   :  { %v342_v6 = vmul.f32 %v334_v63, %v614_v3  ;;  %v339_v14 = vmul.f32 %v328_v5, %v595_v0 }
 0x392   :  { %353 = vrot.lane.b32.xlu1 %v342_v6, %s553_s30 }
 0x393   :  { %v330_v8 = vpop.permute.xlu1 %329  ;;  %v380_v10 = vpop.permute.xlu0 %379 }
 0x394   :  { %v340_v16 = vmul.f32 %v330_v8, %v609_v2  ;;  %v391_v17 = vmul.f32 %v380_v10, %v595_v0 }
 0x397   :  { %v382_v11 = vpop.permute.xlu1 %381  ;;  %v384_v9 = vpop.permute.xlu0 %383 }
 0x398   :  { %v393_v12 = vmul.f32 %v384_v9, %v600_v1  ;;  %v392_v18 = vmul.f32 %v382_v11, %v609_v2 }
 0x39a   :  { %403 = vrot.lane.b32.xlu0 %v393_v12, %s553_s30 }
 0x39b   :  { %v386_v4 = vpop.permute.xlu1 %385  ;;  %v364_v19 = vpop.permute.xlu0 %363 }
 0x39c   :  { %v394_v15 = vmul.f32 %v386_v4, %v614_v3  ;;  %v375_v37 = vmul.f32 %v364_v19, %v595_v0 }
 0x39e   :  { %405 = vrot.lane.b32.xlu1 %v394_v15, %s553_s30  ;;  %347 = vrot.lane.b32.xlu0 %v339_v14, %s553_s30 }
 0x39f   :  { %v370_v20 = vpop.permute.xlu1 %369  ;;  %v368_v21 = vpop.permute.xlu0 %367 }
 0x3a0   :  { %v377_v43 = vmul.f32 %v368_v21, %v600_v1  ;;  %v378_v0 = vmul.f32 %v370_v20, %v614_v3 }
 0x3a2   :  { %349 = vrot.lane.b32.xlu1 %v340_v16, %s553_s30  ;;  %399 = vrot.lane.b32.xlu0 %v391_v17, %s553_s30 }
 0x3a3   :  { %v422_v22 = vpop.permute.xlu1 %421  ;;  %v420_v23 = vpop.permute.xlu0 %419 }
 0x3a6   :  { %401 = vrot.lane.b32.xlu1 %v392_v18, %s553_s30  ;;  %439 = vrot.lane.b32.xlu0 %v636_v7, %s552_s25 }
 0x3a7   :  { %v426_v24 = vpop.permute.xlu1 %425  ;;  %v424_v25 = vpop.permute.xlu0 %423 }
 0x3aa   :  { %441 = vrot.lane.b32.xlu1 %v649_v13, %s552_s25 }
 0x3ab   :  { %v438_v26 = vpop.permute.xlu1 %437  ;;  %v436_v27 = vpop.permute.xlu0 %435 }
 0x3af   :  { %v366_v28 = vpop.permute.xlu1 %365 }
 0x3b0   :  { %v376_v44 = vmul.f32 %v366_v28, %v609_v2 }
 0x400   :  { %v352_v29 = vpop.permute.xlu0 %351 }
 0x401   :  { %v361_v30 = vsub.f32 %v341_v62, %v352_v29 }
 0x403   :  { %v433_v31 = vadd.f32 %v424_v25, %v361_v30 }
 0x404   :  { %v354_v32 = vpop.permute.xlu1 %353 }
 0x405   :  { %v362_v33 = vsub.f32 %v342_v6, %v354_v32  ;;  %459 = vrot.lane.b32.xlu0 %v433_v31, %s556_s5 }
 0x407   :  { %v434_v7 = vadd.f32 %v426_v24, %v362_v33 }
 0x409   :  { %461 = vrot.lane.b32.xlu1 %v434_v7, %s556_s5 }
 0x40c   :  { %v404_v13 = vpop.permute.xlu0 %403 }
 0x40d   :  { %v413_v49 = vadd.f32 %v404_v13, %v377_v43 }
 0x410   :  { %v406_v34 = vpop.permute.xlu1 %405  ;;  %v348_v35 = vpop.permute.xlu0 %347 }
 0x411   :  { %v359_v36 = vsub.f32 %v339_v14, %v348_v35  ;;  %v414_v54 = vadd.f32 %v406_v34, %v378_v0 }
 0x413   :  { %v431_v38 = vadd.f32 %v420_v23, %v359_v36 }
 0x414   :  { %v350_v39 = vpop.permute.xlu1 %349  ;;  %v400_v40 = vpop.permute.xlu0 %399 }
 0x415   :  { %v360_v41 = vsub.f32 %v340_v16, %v350_v39  ;;  %v411_v42 = vadd.f32 %v400_v40, %v375_v37  ;;  %455 = vrot.lane.b32.xlu0 %v431_v38, %s556_s5 }
 0x417   :  { %v432_v45 = vadd.f32 %v422_v22, %v360_v41  ;;  %v447_v46 = vadd.f32 %v436_v27, %v411_v42 }
 0x418   :  { %v402_v47 = vpop.permute.xlu1 %401  ;;  %v440_v48 = vpop.permute.xlu0 %439 }
 0x419   :  { %v412_v50 = vadd.f32 %v402_v47, %v376_v44  ;;  %457 = vrot.lane.b32.xlu1 %v432_v45, %s556_s5  ;;  %475 = vrot.lane.b32.xlu0 %v447_v46, %s553_s30  ;;  %v449_v52 = vadd.f32 %v440_v48, %v413_v49 }
 0x41b   :  { %v448_v51 = vadd.f32 %v438_v26, %v412_v50 }
 0x41c   :  { %v442_v53 = vpop.permute.xlu1 %441 }
 0x41d   :  { %477 = vrot.lane.b32.xlu1 %v448_v51, %s553_s30  ;;  %479 = vrot.lane.b32.xlu0 %v449_v52, %s553_s30  ;;  %v450_v1 = vadd.f32 %v442_v53, %v414_v54 }
 0x421   :  { %481 = vrot.lane.b32.xlu1 %v450_v1, %s553_s30 }
 0x477   :  { %v460_v2 = vpop.permute.xlu0 %459 }
 0x478   :  { %469 = vst.msk [vmem:[%s767_s6 + $0x10] sm:$0xff] %vm128_vm0, %v460_v2 }
 0x47b   :  { %v462_v55 = vpop.permute.xlu1 %461 }
 0x47c   :  { %470 = vst.msk [vmem:[%s767_s6 + $0x18] sm:$0xff] %vm128_vm0, %v462_v55 }
 0x487   :  { %v456_v3 = vpop.permute.xlu0 %455 }
 0x488   :  { %467 = vst.msk [vmem:[%s767_s6] sm:$0xff] %vm128_vm0, %v456_v3 }
 0x48b   :  { %v458_v56 = vpop.permute.xlu1 %457  ;;  %v476_v57 = vpop.permute.xlu0 %475 }
 0x48c   :  { %468 = vst.msk [vmem:[%s767_s6 + $0x8] sm:$0xff] %vm128_vm0, %v458_v56 }
 0x48d   :  { %488 = vst.msk [vmem:[%s767_s6] sm:$0xff] %vm487_vm3, %v476_v57 }
 0x48f   :  { %v478_v58 = vpop.permute.xlu1 %477  ;;  %v480_v59 = vpop.permute.xlu0 %479 }
 0x490   :  { %489 = vst.msk [vmem:[%s767_s6 + $0x8] sm:$0xff] %vm487_vm3, %v478_v58  ;;  %490 = vst.msk [vmem:[%s767_s6 + $0x10] sm:$0xff] %vm487_vm3, %v480_v59 }
 0x493   :  { %v482_v60 = vpop.permute.xlu1 %481 }
 0x494   :  { %491 = vst.msk [vmem:[%s767_s6 + $0x18] sm:$0xff] %vm487_vm3, %v482_v60 }

// kernel: _lambda_.6
= control target key start
LH: loop header
LB: loop body
LE: loop exit
PB: predicated region body
PF: predicated region fallthrough
CT: control target
= control target key end

     0   :  { %s400_s23 = smov 16   ;;  %s401_s24 = smov 112   ;;  %v402_v3 = vmov 0.0   ;;  %vm403_vm0 = vmmov 0   ;;  %vm76_vm1 = vcmask 130048   ;;  %vm103_vm2 = vcmask 261120   ;;  %s543_s1 = inlined_call_operand.vmem [shape: f32[16,64], index: 1, kind: input, shape index: {}]   ;;  %s544_s0 = inlined_call_operand.vmem [shape: f32[16,32], index: 0, kind: input, shape index: {}]   ;;  %s545_s2 = inlined_call_operand.vmem [shape: bf16[32,64], index: 2, kind: input, shape index: {}]   ;;  %s546_s4 = inlined_call_operand.vmem [shape: bf16[64,32], index: 4, kind: input, shape index: {}]   ;;  %s547_s3 = inlined_call_operand.vmem [shape: f32[1,64], index: 3, kind: input, shape index: {}]   ;;  %s548_s5 = inlined_call_operand.vmem [shape: f32[1,32], index: 5, kind: input, shape index: {}]   ;;  %s549_s6 = inlined_call_operand.vmem [shape: f32[16,32], index: 6, kind: output, shape index: {}]  }
   0x1   :  { %v445_v0 = vld [vmem:[%s543_s1] sm:$0xff]  ;;  %v454_v1 = vld [vmem:[%s543_s1 + $0x8] sm:$0xff]  ;;  %358 = vmatprep.subr.bf16.mxu0 %v402_v3  ;;  %366 = vmatprep.subr.bf16.mxu1 %v402_v3  ;;  %v392_v32 = vld [vmem:[%s546_s4 + $0x18] sm:$0xff]   ;;  %vm206_vm3 = vcmask 523264   ;;  %s404_s18 = smov 32   ;;  %s405_s19 = smov 48  }
   0x2   :  { %50 = vrot.lane.b32.xlu0 %v445_v0, %s400_s23  ;;  %42 = vrot.lane.b32.xlu1 %v445_v0, %s401_s24  ;;  %v463_v2 = vld [vmem:[%s544_s0] sm:$0xff]  ;;  %v390_v4 = vld [vmem:[%s545_s2 + $0x8] sm:$0xff]   ;;  %vm333_vm4 = vcmask 261248  }
   0x3   :  { %359 = vmatpush3.bf16.msra.mxu0 %v390_v4  ;;  %v472_v7 = vld [vmem:[%s544_s0 + $0x8] sm:$0xff]  ;;  %v28_v8 = vmul.f32 %v445_v0, %v463_v2  ;;  %v391_v13 = vld [vmem:[%s545_s2] sm:$0xff]   ;;  %362 = vmatprep.mubr.msk.bf16.mxu0 %vm403_vm0, %v402_v3  ;;  %v393_v33 = vld [vmem:[%s546_s4 + $0x10] sm:$0xff]  }
   0x4   :  { %360 = vmatprep.subr.bf16.mxu0 %v402_v3  ;;  %v29_v11 = vmul.f32 %v454_v1, %v472_v7  ;;  %374 = vmatprep.mubr.msk.bf16.mxu1 %vm403_vm0, %v402_v3  ;;  %v394_v34 = vld [vmem:[%s546_s4 + $0x8] sm:$0xff]   ;;  %v395_v35 = vld [vmem:[%s546_s4] sm:$0xff]  }
   0x5   :  { %367 = vmatpush3.bf16.msra.mxu1 %v392_v32  ;;  %v340_v36 = vld [vmem:[%s547_s3] ss:$0 sm:$0xff] }
   0x6   :  { %52 = vrot.lane.b32.xlu0 %v454_v1, %s400_s23  ;;  %44 = vrot.lane.b32.xlu1 %v454_v1, %s401_s24  ;;  %v344_v62 = vld [vmem:[%s548_s5] ss:$0 sm:$0xff]  ;;  %s406_s5 = smov 96  }
   0x7   :  { %361 = vmatpush3.bf16.msra.mxu0 %v391_v13  ;;  %368 = vmatprep.subr.bf16.mxu1 %v402_v3 }
   0x9   :  { %369 = vmatpush3.bf16.msra.mxu1 %v393_v33 }
   0xa   :  { %370 = vmatprep.subr.bf16.mxu1 %v402_v3 }
   0xd   :  { %371 = vmatpush3.bf16.msra.mxu1 %v394_v34 }
   0xe   :  { %372 = vmatprep.subr.bf16.mxu1 %v402_v3 }
  0x11   :  { %373 = vmatpush3.bf16.msra.mxu1 %v395_v35 }
  0x74   :  { %v51_v5 = vpop.permute.xlu0 %50  ;;  %v43_v12 = vpop.permute.xlu1 %42 }
  0x75   :  { %v56_v6 = vmul.f32 %v51_v5, %v463_v2  ;;  %v48_v16 = vmul.f32 %v43_v12, %v463_v2 }
  0x77   :  { %60 = vrot.lane.b32.xlu0 %v56_v6, %s401_s24 }
  0x78   :  { %v53_v9 = vpop.permute.xlu0 %52  ;;  %v45_v14 = vpop.permute.xlu1 %44 }
  0x79   :  { %v57_v10 = vmul.f32 %v53_v9, %v472_v7  ;;  %v49_v17 = vmul.f32 %v45_v14, %v472_v7 }
  0x7b   :  { %62 = vrot.lane.b32.xlu1 %v57_v10, %s401_s24  ;;  %32 = vrot.lane.b32.xlu0 %v28_v8, %s401_s24 }
  0x7f   :  { %34 = vrot.lane.b32.xlu1 %v29_v11, %s401_s24 }
  0xe9   :  { %v61_v15 = vpop.permute.xlu0 %60 }
  0xea   :  { %v66_v19 = vadd.f32 %v61_v15, %v48_v16 }
  0xed   :  { %v63_v18 = vpop.permute.xlu1 %62  ;;  %v33_v22 = vpop.permute.xlu0 %32 }
  0xee   :  { %v67_v20 = vadd.f32 %v63_v18, %v49_v17  ;;  %v38_v26 = vsub.f32 %v28_v8, %v33_v22 }
  0xf0   :  { %v385_v21 = vpack.i.bf16 %v67_v20, %v66_v19 }
  0xf1   :  { %v35_v23 = vpop.permute.xlu1 %34 }
  0xf2   :  { %386 = vrot.lane.b32.xlu0 %v385_v21, %s400_s23  ;;  %v39_v24 = vsub.f32 %v29_v11, %v35_v23 }
 0x164   :  { %v387_v25 = vpop.permute.xlu0 %386 }
 0x165   :  { %v389_v27 = vunpack.i.h.bf16 %v387_v25  ;;  %v388_v28 = vunpack.i.l.bf16 %v387_v25 }
 0x167   :  { %v78_v29 = vsel %vm76_vm1, %v39_v24, %v389_v27  ;;  %v77_v30 = vsel %vm76_vm1, %v38_v26, %v388_v28 }
 0x168   :  { %v79_v31 = vpack.c.bf16 %v78_v29, %v77_v30 }
 0x16a   :  { %363 = vmatmul.mubr.msk.bf16.vlgmr.msra.gmra.mxu0 %vm103_vm2, %v79_v31 }
 0x22a   :  { %v141_v37 = vpop.f32.mrf.mxu0 }
 0x22b   :  { %v142_v38 = vadd.f32 %v340_v36, %v141_v37 }
 0x22c   :  { %v364_v39 = vpop.f32.mrf.mxu0 }
 0x22d   :  { %v150_v40 = vmul.f32 0.044715, %v142_v38  ;;  %v148_v56 = vmul.f32 0.5, %v142_v38 }
 0x22e   :  { %v144_v41 = vpop.f32.mrf.mxu0 }
 0x22f   :  { %v152_v42 = vmul.f32 %v150_v40, %v142_v38  ;;  %v145_v43 = vadd.f32 %v340_v36, %v144_v41 }
 0x230   :  { %v365_v44 = vpop.f32.mrf.mxu0 }
 0x231   :  { %v154_v45 = vmul.f32 %v152_v42, %v142_v38  ;;  %v151_v46 = vmul.f32 0.044715, %v145_v43  ;;  %v149_v57 = vmul.f32 0.5, %v145_v43 }
 0x233   :  { %v156_v47 = vadd.f32 %v154_v45, %v142_v38  ;;  %v153_v48 = vmul.f32 %v151_v46, %v145_v43 }
 0x235   :  { %v158_v49 = vmul.f32 0.7978846, %v156_v47  ;;  %v155_v50 = vmul.f32 %v153_v48, %v145_v43 }
 0x237   :  { %396 = vtanh.f32 %v158_v49  ;;  %v157_v51 = vadd.f32 %v155_v50, %v145_v43 }
 0x239   :  { %v159_v52 = vmul.f32 0.7978846, %v157_v51 }
 0x23b   :  { %398 = vtanh.f32 %v159_v52 }
 0x244   :  { %v397_v53 = vpop.eup %396 }
 0x245   :  { %v162_v54 = vadd.f32 1.0, %v397_v53 }
 0x247   :  { %v164_v59 = vmul.f32 %v162_v54, %v148_v56 }
 0x248   :  { %v399_v55 = vpop.eup %398 }
 0x249   :  { %v163_v58 = vadd.f32 1.0, %v399_v55 }
 0x24b   :  { %v165_v60 = vmul.f32 %v163_v58, %v149_v57 }
 0x24d   :  { %v166_v61 = vpack.c.bf16 %v165_v60, %v164_v59 }
 0x24f   :  { %375 = vmatmul.mubr.msk.bf16.vlgmr.msra.gmra.mxu1 %vm206_vm3, %v166_v61 }
 0x30f   :  { %v244_v63 = vpop.f32.mrf.mxu1 }
 0x310   :  { %v245_v3 = vadd.f32 %v344_v62, %v244_v63 }
 0x311   :  { %v376_v4 = vpop.f32.mrf.mxu1 }
 0x312   :  { %253 = vrot.lane.b32.xlu1 %v245_v3, %s404_s18 }
 0x313   :  { %v247_v5 = vpop.f32.mrf.mxu1 }
 0x314   :  { %v248_v6 = vadd.f32 %v344_v62, %v247_v5 }
 0x315   :  { %v377_v8 = vpop.f32.mrf.mxu1 }
 0x316   :  { %279 = vrot.lane.b32.xlu1 %v245_v3, %s405_s19  ;;  %255 = vrot.lane.b32.xlu0 %v248_v6, %s404_s18 }
 0x31a   :  { %271 = vrot.lane.b32.xlu1 %v245_v3, %s400_s23  ;;  %281 = vrot.lane.b32.xlu0 %v248_v6, %s405_s19 }
 0x31e   :  { %301 = vrot.lane.b32.xlu0 %v472_v7, %s404_s18  ;;  %299 = vrot.lane.b32.xlu1 %v463_v2, %s404_s18 }
 0x322   :  { %273 = vrot.lane.b32.xlu0 %v248_v6, %s400_s23 }
 0x384   :  { %v254_v9 = vpop.permute.xlu1 %253 }
 0x385   :  { %v259_v10 = vmul.f32 %v254_v9, %v445_v0 }
 0x387   :  { %263 = vrot.lane.b32.xlu1 %v259_v10, %s401_s24 }
 0x388   :  { %v280_v11 = vpop.permute.xlu1 %279  ;;  %v256_v12 = vpop.permute.xlu0 %255 }
 0x389   :  { %v285_v13 = vmul.f32 %v280_v11, %v445_v0  ;;  %v260_v14 = vmul.f32 %v256_v12, %v454_v1 }
 0x38b   :  { %289 = vrot.lane.b32.xlu1 %v285_v13, %s401_s24  ;;  %265 = vrot.lane.b32.xlu0 %v260_v14, %s401_s24 }
 0x38c   :  { %v282_v15 = vpop.permute.xlu0 %281  ;;  %v272_v17 = vpop.permute.xlu1 %271 }
 0x38d   :  { %v286_v16 = vmul.f32 %v282_v15, %v454_v1  ;;  %v277_v26 = vmul.f32 %v272_v17, %v445_v0 }
 0x38f   :  { %307 = vrot.lane.b32.xlu1 %v463_v2, %s400_s23  ;;  %291 = vrot.lane.b32.xlu0 %v286_v16, %s401_s24 }
 0x390   :  { %v302_v18 = vpop.permute.xlu0 %301  ;;  %v300_v19 = vpop.permute.xlu1 %299 }
 0x393   :  { %309 = vrot.lane.b32.xlu0 %v472_v7, %s400_s23 }
 0x394   :  { %v274_v20 = vpop.permute.xlu0 %273 }
 0x395   :  { %v278_v7 = vmul.f32 %v274_v20, %v454_v1 }
 0x3f9   :  { %v264_v21 = vpop.permute.xlu1 %263 }
 0x3fa   :  { %v269_v22 = vsub.f32 %v259_v10, %v264_v21 }
 0x3fc   :  { %v305_v23 = vadd.f32 %v300_v19, %v269_v22 }
 0x3fd   :  { %v290_v24 = vpop.permute.xlu1 %289  ;;  %v266_v25 = vpop.permute.xlu0 %265 }
 0x3fe   :  { %v270_v27 = vsub.f32 %v260_v14, %v266_v25  ;;  %317 = vrot.lane.b32.xlu1 %v305_v23, %s406_s5  ;;  %v295_v2 = vadd.f32 %v290_v24, %v277_v26 }
 0x400   :  { %v306_v28 = vadd.f32 %v302_v18, %v270_v27 }
 0x401   :  { %v308_v29 = vpop.permute.xlu1 %307  ;;  %v292_v30 = vpop.permute.xlu0 %291 }
 0x402   :  { %v313_v31 = vadd.f32 %v308_v29, %v295_v2  ;;  %319 = vrot.lane.b32.xlu0 %v306_v28, %s406_s5  ;;  %v296_v32 = vadd.f32 %v292_v30, %v278_v7 }
 0x404   :  { %327 = vrot.lane.b32.xlu1 %v313_v31, %s401_s24 }
 0x405   :  { %v310_v33 = vpop.permute.xlu0 %309 }
 0x406   :  { %v314_v34 = vadd.f32 %v310_v33, %v296_v32 }
 0x408   :  { %329 = vrot.lane.b32.xlu0 %v314_v34, %s401_s24 }
 0x470   :  { %v318_v35 = vpop.permute.xlu1 %317 }
 0x471   :  { %323 = vst.msk [vmem:[%s549_s6] sm:$0xff] %vm76_vm1, %v318_v35 }
 0x474   :  { %v320_v0 = vpop.permute.xlu0 %319 }
 0x475   :  { %324 = vst.msk [vmem:[%s549_s6 + $0x8] sm:$0xff] %vm76_vm1, %v320_v0 }
 0x476   :  { %v328_v1 = vpop.permute.xlu1 %327 }
 0x477   :  { %334 = vst.msk [vmem:[%s549_s6] sm:$0xff] %vm333_vm4, %v328_v1 }
 0x47a   :  { %v330_v36 = vpop.permute.xlu0 %329 }
 0x47b   :  { %335 = vst.msk [vmem:[%s549_s6 + $0x8] sm:$0xff] %vm333_vm4, %v330_v36 }

// kernel: _lambda_.5
= control target key start
LH: loop header
LB: loop body
LE: loop exit
PB: predicated region body
PF: predicated region fallthrough
CT: control target
= control target key end

     0   :  { %v896_v0 = vmov 0.0   ;;  %vm897_vm0 = vmmov 0   ;;  %vm74_vm1 = vcmask 261120   ;;  %vm167_vm2 = vcmask 523264   ;;  %s903_s24 = smov 96   ;;  %s904_s25 = smov 104   ;;  %s1188_s1 = inlined_call_operand.vmem [shape: bf16[32,64], index: 1, kind: input, shape index: {}]   ;;  %s1189_s0 = inlined_call_operand.vmem [shape: f32[2,32], index: 0, kind: input, shape index: {}]   ;;  %s1190_s3 = inlined_call_operand.vmem [shape: bf16[64,32], index: 3, kind: input, shape index: {}]   ;;  %s1191_s2 = inlined_call_operand.vmem [shape: f32[1,64], index: 2, kind: input, shape index: {}]   ;;  %s1192_s5 = inlined_call_operand.vmem [shape: bf16[32,96], index: 5, kind: input, shape index: {}]   ;;  %s1193_s9 = inlined_call_operand.vmem [shape: bf16[32,96], index: 9, kind: input, shape index: {}]   ;;  %s1194_s7 = inlined_call_operand.vmem [shape: bf16[32,48], index: 7, kind: input, shape index: {}]   ;;  %s1195_s11 = inlined_call_operand.vmem [shape: bf16[32,48], index: 11, kind: input, shape index: {}]   ;;  %s1196_s4 = inlined_call_operand.vmem [shape: f32[1,32], index: 4, kind: input, shape index: {}]   ;;  %s1197_s6 = inlined_call_operand.vmem [shape: f32[1,96], index: 6, kind: input, shape index: {}]   ;;  %s1198_s10 = inlined_call_operand.vmem [shape: f32[1,96], index: 10, kind: input, shape index: {}]   ;;  %s1199_s8 = inlined_call_operand.vmem [shape: f32[1,48], index: 8, kind: input, shape index: {}]   ;;  %s1200_s12 = inlined_call_operand.vmem [shape: f32[1,48], index: 12, kind: input, shape index: {}]   ;;  %s1201_s13 = inlined_call_operand.vmem [shape: f32[2,8,64], index: 13, kind: output, shape index: {0}]   ;;  %s1202_s15 = inlined_call_operand.vmem [shape: f32[2,8,64], index: 15, kind: output, shape index: {2}]   ;;  %s1203_s14 = inlined_call_operand.vmem [shape: f32[2,16,32], index: 14, kind: output, shape index: {1}]   ;;  %s1204_s16 = inlined_call_operand.vmem [shape: f32[2,16,32], index: 16, kind: output, shape index: {3}]  }
   0x1   :  { %1206 = sst [smem:[#allocation2_spill]] %s1188_s1  ;;  %814 = vmatprep.subr.bf16.mxu0 %v896_v0  ;;  %818 = vmatprep.mubr.msk.bf16.mxu0 %vm897_vm0, %v896_v0  ;;  %v49_v3 = vld [vmem:[%s1189_s0] sm:$0x3]  ;;  %v880_v5 = vld [vmem:[%s1190_s3 + $0x18] sm:$0xff]   ;;  %v881_v6 = vld [vmem:[%s1190_s3 + $0x10] sm:$0xff]   ;;  %s905_s26 = smov 112  }
   0x2   :  { %s1207_s23 = sld [smem:[#allocation2_spill]]  ;;  %822 = vmatprep.subr.bf16.mxu1 %v896_v0  ;;  %830 = vmatprep.mubr.msk.bf16.mxu1 %vm897_vm0, %v896_v0  ;;  %v50_v4 = vpack.c.bf16 %v49_v3, %v49_v3  ;;  %v882_v7 = vld [vmem:[%s1190_s3 + $0x8] sm:$0xff]   ;;  %v883_v8 = vld [vmem:[%s1190_s3] sm:$0xff]   ;;  %s906_s27 = smov 120   ;;  %vm316_vm3 = vcmask 130048   ;;  %vm319_vm4 = vcmask 392192  }
   0x3   :  { %823 = vmatpush3.bf16.msra.mxu1 %v880_v5  ;;  %v768_v9 = vld [vmem:[%s1191_s2] ss:$0 sm:$0xff]  ;;  %v884_v25 = vld [vmem:[%s1192_s5 + $0x8] sm:$0xff]   ;;  %vm448_vm5 = vcmask 64512   ;;  %vm451_vm6 = vcmask 195584  }
   0x4   :  { %824 = vmatprep.subr.bf16.mxu1 %v896_v0  ;;  %v885_v26 = vld [vmem:[%s1193_s9 + $0x8] sm:$0xff]   ;;  %v886_v27 = vld [vmem:[%s1192_s5] sm:$0xff]  }
   0x5   :  { %v887_v28 = vld [vmem:[%s1193_s9] sm:$0xff]   ;;  %v888_v44 = vld [vmem:[%s1194_s7 + $0x8] sm:$0xff]  }
   0x6   :  { %v772_v29 = vld [vmem:[%s1196_s4] ss:$0 sm:$0xff]  ;;  %v890_v47 = vld [vmem:[%s1195_s11 + $0x8] sm:$0xff]  }
   0x7   :  { %825 = vmatpush3.bf16.msra.mxu1 %v881_v6  ;;  %v889_v46 = vld [vmem:[%s1194_s7] sm:$0xff]  }
   0x8   :  { %v878_v1 = vld [vmem:[%s1207_s23 + $0x8] sm:$0xff]   ;;  %v879_v2 = vld [vmem:[%s1207_s23] sm:$0xff]   ;;  %826 = vmatprep.subr.bf16.mxu1 %v896_v0  ;;  %s900_s23 = smov 64  }
   0x9   :  { %815 = vmatpush3.bf16.msra.mxu0 %v878_v1  ;;  %v891_v48 = vld [vmem:[%s1195_s11] sm:$0xff]   ;;  %s898_s11 = smov 16  }
   0xa   :  { %816 = vmatprep.subr.bf16.mxu0 %v896_v0  ;;  %v778_v49 = vld [vmem:[%s1197_s6] ss:$0 sm:$0xff] }
   0xb   :  { %827 = vmatpush3.bf16.msra.mxu1 %v882_v7  ;;  %v786_v50 = vld [vmem:[%s1198_s10] ss:$0 sm:$0xff]  ;;  %s899_s10 = smov 8  }
   0xc   :  { %828 = vmatprep.subr.bf16.mxu1 %v896_v0  ;;  %v782_v61 = vld [vmem:[%s1199_s8] ss:$0 sm:$0xff]  ;;  %s901_s8 = smov 32  }
   0xd   :  { %817 = vmatpush3.bf16.msra.mxu0 %v879_v2  ;;  %v790_v3 = vld [vmem:[%s1200_s12] ss:$0 sm:$0xff]  ;;  %s902_s12 = smov 80  }
   0xe   :  { %834 = vmatprep.subr.bf16.mxu0 %v896_v0 }
   0xf   :  { %829 = vmatpush3.bf16.msra.mxu1 %v883_v8 }
  0x10   :  { %819 = vmatmul.mubr.msk.bf16.vlgmr.msra.gmra.mxu0 %vm74_vm1, %v50_v4  ;;  %850 = vmatprep.subr.bf16.mxu1 %v896_v0 }
  0x11   :  { %838 = vmatprep.mubr.msk.bf16.mxu0 %vm897_vm0, %v896_v0  ;;  %835 = vmatpush3.bf16.msra.mxu0 %v884_v25 }
  0x12   :  { %836 = vmatprep.subr.bf16.mxu0 %v896_v0 }
  0x15   :  { %837 = vmatpush3.bf16.msra.mxu0 %v886_v27 }
  0x16   :  { %842 = vmatprep.subr.bf16.mxu0 %v896_v0 }
  0xd0   :  { %v112_v10 = vpop.f32.mrf.mxu0 }
  0xd1   :  { %v113_v11 = vadd.f32 %v768_v9, %v112_v10 }
  0xd2   :  { %v820_v12 = vpop.f32.mrf.mxu0 }
  0xd3   :  { %v119_v13 = vmul.f32 0.044715, %v113_v11  ;;  %v118_v21 = vmul.f32 0.5, %v113_v11 }
  0xd4   :  { %v115_v14 = vpop.f32.mrf.mxu0 }
  0xd5   :  { %v120_v15 = vmul.f32 %v119_v13, %v113_v11 }
  0xd6   :  { %v821_v16 = vpop.f32.mrf.mxu0 }
  0xd7   :  { %v121_v17 = vmul.f32 %v120_v15, %v113_v11 }
  0xd9   :  { %v122_v18 = vadd.f32 %v121_v17, %v113_v11 }
  0xdb   :  { %v123_v19 = vmul.f32 0.7978846, %v122_v18 }
  0xdd   :  { %892 = vtanh.f32 %v123_v19 }
  0xea   :  { %v893_v20 = vpop.eup %892 }
  0xeb   :  { %v125_v22 = vadd.f32 1.0, %v893_v20 }
  0xed   :  { %v126_v23 = vmul.f32 %v125_v22, %v118_v21 }
  0xef   :  { %v127_v24 = vpack.c.bf16 %v126_v23, %v126_v23 }
  0xf1   :  { %831 = vmatmul.mubr.msk.bf16.vlgmr.msra.gmra.mxu1 %vm167_vm2, %v127_v24 }
  0xf2   :  { %854 = vmatprep.mubr.msk.bf16.mxu1 %vm897_vm0, %v896_v0  ;;  %851 = vmatpush3.bf16.msra.mxu1 %v885_v26 }
  0xf3   :  { %852 = vmatprep.subr.bf16.mxu1 %v896_v0 }
  0xf6   :  { %853 = vmatpush3.bf16.msra.mxu1 %v887_v28 }
 0x1b1   :  { %v205_v30 = vpop.f32.mrf.mxu1 }
 0x1b2   :  { %v206_v31 = vadd.f32 %v772_v29, %v205_v30 }
 0x1b3   :  { %v832_v32 = vpop.f32.mrf.mxu1 }
 0x1b4   :  { %v212_v33 = vmul.f32 0.044715, %v206_v31  ;;  %v211_v41 = vmul.f32 0.5, %v206_v31 }
 0x1b5   :  { %v208_v34 = vpop.f32.mrf.mxu1 }
 0x1b6   :  { %v213_v35 = vmul.f32 %v212_v33, %v206_v31 }
 0x1b7   :  { %v833_v36 = vpop.f32.mrf.mxu1 }
 0x1b8   :  { %v214_v37 = vmul.f32 %v213_v35, %v206_v31 }
 0x1ba   :  { %v215_v38 = vadd.f32 %v214_v37, %v206_v31 }
 0x1bc   :  { %v216_v39 = vmul.f32 0.7978846, %v215_v38 }
 0x1be   :  { %894 = vtanh.f32 %v216_v39 }
 0x1cb   :  { %v895_v40 = vpop.eup %894 }
 0x1cc   :  { %v218_v42 = vadd.f32 1.0, %v895_v40 }
 0x1ce   :  { %v219_v43 = vmul.f32 %v218_v42, %v211_v41 }
 0x1d0   :  { %v220_v45 = vpack.c.bf16 %v219_v43, %v219_v43 }
 0x1d2   :  { %839 = vmatmul.mubr.msk.bf16.vlgmr.msra.gmra.mxu0 %vm74_vm1, %v220_v45  ;;  %855 = vmatmul.mubr.msk.bf16.vlgmr.msra.gmra.mxu1 %vm74_vm1, %v220_v45 }
 0x1d3   :  { %843 = vmatpush3.bf16.msra.mxu0 %v888_v44  ;;  %846 = vmatprep.mubr.msk.bf16.mxu0 %vm897_vm0, %v896_v0 }
 0x1d4   :  { %844 = vmatprep.subr.bf16.mxu0 %v896_v0 }
 0x1d7   :  { %845 = vmatpush3.bf16.msra.mxu0 %v889_v46  ;;  %v907_v46 = vmov 1966171168  }
 0x1d8   :  { %858 = vmatprep.subr.bf16.mxu0 %v896_v0 }
 0x1da   :  { %847 = vmatmul.mubr.msk.bf16.vlgmr.msra.gmra.mxu0 %vm74_vm1, %v220_v45 }
 0x1db   :  { %859 = vmatpush3.bf16.msra.mxu0 %v890_v47  ;;  %862 = vmatprep.mubr.msk.bf16.mxu0 %vm897_vm0, %v896_v0  ;;  %v323_v47 = vunpack.c.l.s4 %v907_v46 }
 0x1dc   :  { %860 = vmatprep.subr.bf16.mxu0 %v896_v0 }
 0x1df   :  { %861 = vmatpush3.bf16.msra.mxu0 %v891_v48  ;;  %v325_v48 = vlaneseq }
 0x1e2   :  { %863 = vmatmul.mubr.msk.bf16.vlgmr.msra.gmra.mxu0 %vm74_vm1, %v220_v45 }
 0x292   :  { %v281_v51 = vpop.f32.mrf.mxu0  ;;  %v547_v52 = vpop.f32.mrf.mxu1 }
 0x293   :  { %v1082_v53 = vadd.f32 %v778_v49, %v281_v51  ;;  %v1084_v54 = vadd.f32 %v786_v50, %v547_v52  ;;  %v324_v50 = vunpack.c.0.s8 %v323_v47  ;;  %v326_v51 = vshrl.u32 %v325_v48, 7 }
 0x294   :  { %v840_v55 = vpop.f32.mrf.mxu0  ;;  %v856_v56 = vpop.f32.mrf.mxu1 }
 0x295   :  { %555 = vrot.lane.b32.xlu1 %v1084_v54, %s898_s11  ;;  %289 = vrot.lane.b32.xlu0 %v1082_v53, %s898_s11  ;;  %v287_v25 = vadd.f32 1.0, %v1082_v53  ;;  %v553_v28 = vadd.f32 1.0, %v1084_v54 }
 0x296   :  { %v284_v57 = vpop.f32.mrf.mxu0  ;;  %v550_v58 = vpop.f32.mrf.mxu1 }
 0x297   :  { %v327_v57 = vsub.s32 %v324_v50, %v326_v51 }
 0x298   :  { %v841_v59 = vpop.f32.mrf.mxu0  ;;  %v857_v60 = vpop.f32.mrf.mxu1 }
 0x29a   :  { %v413_v62 = vpop.f32.mrf.mxu0 }
 0x29b   :  { %v1091_v63 = vadd.f32 %v782_v61, %v413_v62 }
 0x29c   :  { %v848_v0 = vpop.f32.mrf.mxu0 }
 0x29d   :  { %421 = vrot.lane.b32.xlu0 %v1091_v63, %s899_s10  ;;  %v419_v32 = vadd.f32 1.0, %v1091_v63 }
 0x29e   :  { %v416_v1 = vpop.f32.mrf.mxu0 }
 0x2a0   :  { %v849_v2 = vpop.f32.mrf.mxu0 }
 0x2a1   :  { %303 = vrot.lane.b32.xlu0 %v1082_v53, %s900_s23  ;;  %v346_v2 = vsub.s32 0, %v326_v51 }
 0x2a2   :  { %v677_v4 = vpop.f32.mrf.mxu0 }
 0x2a3   :  { %v1098_v5 = vadd.f32 %v790_v3, %v677_v4 }
 0x2a4   :  { %v864_v6 = vpop.f32.mrf.mxu0 }
 0x2a5   :  { %569 = vrot.lane.b32.xlu0 %v1084_v54, %s900_s23  ;;  %685 = vrot.lane.b32.xlu1 %v1098_v5, %s899_s10  ;;  %v683_v37 = vadd.f32 1.0, %v1098_v5 }
 0x2a6   :  { %v680_v7 = vpop.f32.mrf.mxu0 }
 0x2a8   :  { %v865_v8 = vpop.f32.mrf.mxu0 }
 0x2a9   :  { %435 = vrot.lane.b32.xlu1 %v1091_v63, %s901_s8 }
 0x2ad   :  { %699 = vrot.lane.b32.xlu1 %v1098_v5, %s901_s8 }
 0x307   :  { %v290_v9 = vpop.permute.xlu0 %289  ;;  %v556_v11 = vpop.permute.xlu1 %555 }
 0x308   :  { %v293_v10 = vmul.f32 %v290_v9, %v1082_v53  ;;  %v559_v12 = vmul.f32 %v556_v11, %v1084_v54  ;;  %v292_v26 = vmul.f32 %v290_v9, %v287_v25  ;;  %v558_v30 = vmul.f32 %v556_v11, %v553_v28 }
 0x30a   :  { %295 = vrot.lane.b32.xlu0 %v293_v10, %s902_s12 }
 0x30e   :  { %561 = vrot.lane.b32.xlu0 %v559_v12, %s902_s12 }
 0x30f   :  { %v422_v13 = vpop.permute.xlu0 %421 }
 0x310   :  { %v425_v14 = vmul.f32 %v422_v13, %v1091_v63  ;;  %v424_v34 = vmul.f32 %v422_v13, %v419_v32 }
 0x312   :  { %299 = vrot.lane.b32.xlu0 %v1082_v53, %s903_s24  ;;  %427 = vrot.lane.b32.xlu1 %v425_v14, %s904_s25 }
 0x313   :  { %v304_v15 = vpop.permute.xlu0 %303 }
 0x314   :  { %v306_v17 = vmul.f32 %v304_v15, %v1082_v53 }
 0x316   :  { %565 = vrot.lane.b32.xlu0 %v1084_v54, %s903_s24 }
 0x317   :  { %v686_v16 = vpop.permute.xlu1 %685  ;;  %v570_v19 = vpop.permute.xlu0 %569 }
 0x318   :  { %v689_v18 = vmul.f32 %v686_v16, %v1098_v5  ;;  %v572_v20 = vmul.f32 %v570_v19, %v1084_v54  ;;  %v688_v38 = vmul.f32 %v686_v16, %v683_v37 }
 0x31a   :  { %308 = vrot.lane.b32.xlu0 %v306_v17, %s902_s12  ;;  %691 = vrot.lane.b32.xlu1 %v689_v18, %s904_s25 }
 0x31b   :  { %v436_v21 = vpop.permute.xlu1 %435 }
 0x31c   :  { %v438_v22 = vmul.f32 %v436_v21, %v1091_v63 }
 0x31e   :  { %574 = vrot.lane.b32.xlu0 %v572_v20, %s902_s12  ;;  %431 = vrot.lane.b32.xlu1 %v1091_v63, %s905_s26 }
 0x31f   :  { %v700_v23 = vpop.permute.xlu1 %699 }
 0x320   :  { %v702_v24 = vmul.f32 %v700_v23, %v1098_v5 }
 0x322   :  { %695 = vrot.lane.b32.xlu1 %v1098_v5, %s905_s26 }
 0x326   :  { %440 = vrot.lane.b32.xlu1 %v438_v22, %s904_s25 }
 0x32a   :  { %704 = vrot.lane.b32.xlu1 %v702_v24, %s904_s25 }
 0x37c   :  { %v296_v27 = vpop.permute.xlu0 %295 }
 0x37d   :  { %v298_v29 = vsub.f32 %v292_v26, %v296_v27 }
 0x37f   :  { %313 = vrot.lane.b32.xlu0 %v298_v29, %s905_s26 }
 0x380   :  { %v562_v31 = vpop.permute.xlu0 %561 }
 0x381   :  { %v564_v33 = vsub.f32 %v558_v30, %v562_v31 }
 0x383   :  { %579 = vrot.lane.b32.xlu0 %v564_v33, %s905_s26 }
 0x384   :  { %v428_v35 = vpop.permute.xlu1 %427  ;;  %v300_v41 = vpop.permute.xlu0 %299 }
 0x385   :  { %v430_v36 = vsub.f32 %v424_v34, %v428_v35  ;;  %v302_v52 = vmul.f32 %v300_v41, %v287_v25 }
 0x387   :  { %445 = vrot.lane.b32.xlu1 %v430_v36, %s906_s27 }
 0x388   :  { %v566_v42 = vpop.permute.xlu0 %565 }
 0x389   :  { %v568_v59 = vmul.f32 %v566_v42, %v553_v28 }
 0x38c   :  { %v692_v39 = vpop.permute.xlu1 %691  ;;  %v309_v44 = vpop.permute.xlu0 %308 }
 0x38d   :  { %v694_v40 = vsub.f32 %v688_v38, %v692_v39  ;;  %v311_v56 = vadd.f32 %v309_v44, %v302_v52 }
 0x38f   :  { %709 = vrot.lane.b32.xlu1 %v694_v40, %s906_s27 }
 0x390   :  { %v432_v43 = vpop.permute.xlu1 %431  ;;  %v575_v49 = vpop.permute.xlu0 %574 }
 0x391   :  { %v577_v62 = vadd.f32 %v575_v49, %v568_v59  ;;  %v434_v6 = vmul.f32 %v432_v43, %v419_v32 }
 0x394   :  { %v1120_v45 = vpop.permute.xlu1 %695 }
 0x395   :  { %v698_v24 = vmul.f32 %v1120_v45, %v683_v37 }
 0x398   :  { %v441_v55 = vpop.permute.xlu1 %440 }
 0x399   :  { %v443_v11 = vadd.f32 %v441_v55, %v434_v6 }
 0x39c   :  { %v705_v1 = vpop.permute.xlu1 %704 }
 0x39d   :  { %v707_v27 = vadd.f32 %v705_v1, %v698_v24 }
 0x3f1   :  { %v314_v58 = vpop.permute.xlu0 %313 }
 0x3f2   :  { %v317_v60 = vsel %vm316_vm3, %v314_v58, %v311_v56 }
 0x3f3   :  { %v318_v61 = vsel %vm74_vm1, %v317_v60, %v1082_v53 }
 0x3f4   :  { %v320_v0 = vsel %vm319_vm4, %v318_v61, %v300_v41 }
 0x3f5   :  { %v328_v3 = vrot.slane %v320_v0, %v327_v57  ;;  %v580_v4 = vpop.permute.xlu0 %579 }
 0x3f6   :  { %v582_v7 = vsel %vm316_vm3, %v580_v4, %v577_v62 }
 0x3f7   :  { %v329_v8 = vcombine.high %v328_v3, %v328_v3  ;;  %v336_v9 = vrot.slane %v328_v3, %v327_v57  ;;  %v583_v10 = vsel %vm74_vm1, %v582_v7, %v1084_v54 }
 0x3f8   :  { %v584_v12 = vsel %vm319_vm4, %v583_v10, %v566_v42 }
 0x3f9   :  { %v343_v53 = vrot.slane %v329_v8, %v327_v57  ;;  %v347_v13 = vrot.slane %v336_v9, %v346_v2  ;;  %v592_v14 = vrot.slane %v584_v12, %v327_v57  ;;  %v446_v15 = vpop.permute.xlu1 %445 }
 0x3fa   :  { %v449_v16 = vsel %vm448_vm5, %v446_v15, %v443_v11 }
 0x3fb   :  { %v351_v17 = vrot.slane %v343_v53, %v346_v2  ;;  %354 = vst.msk [vmem:[%s1201_s13] sm:$0xff] %vm167_vm2, %v347_v13  ;;  %v593_v18 = vcombine.high %v592_v14, %v592_v14  ;;  %v600_v19 = vrot.slane %v592_v14, %v327_v57  ;;  %v450_v54 = vsel %vm316_vm3, %v449_v16, %v1091_v63 }
 0x3fc   :  { %v452_v20 = vsel %vm451_vm6, %v450_v54, %v432_v43 }
 0x3fd   :  { %355 = vst.msk [vmem:[%s1201_s13 + $0x8] sm:$0xff] %vm167_vm2, %v351_v17  ;;  %v607_v21 = vrot.slane %v593_v18, %v327_v57  ;;  %v611_v22 = vrot.slane %v600_v19, %v346_v2  ;;  %v460_v23 = vrot.slane %v452_v20, %v327_v57 }
 0x3ff   :  { %v615_v25 = vrot.slane %v607_v21, %v346_v2  ;;  %618 = vst.msk [vmem:[%s1202_s15] sm:$0xff] %vm167_vm2, %v611_v22  ;;  %v461_v26 = vcombine.high %v460_v23, %v460_v23  ;;  %v468_v63 = vrot.slane %v460_v23, %v327_v57 }
 0x401   :  { %619 = vst.msk [vmem:[%s1202_s15 + $0x8] sm:$0xff] %vm167_vm2, %v615_v25  ;;  %v475_v28 = vrot.slane %v461_v26, %v327_v57  ;;  %v479_v29 = vrot.slane %v468_v63, %v346_v2  ;;  %v710_v30 = vpop.permute.xlu1 %709 }
 0x402   :  { %v712_v31 = vsel %vm448_vm5, %v710_v30, %v707_v27 }
 0x403   :  { %v483_v32 = vrot.slane %v475_v28, %v346_v2  ;;  %486 = vst.msk [vmem:[%s1203_s14] sm:$0xff] %vm74_vm1, %v479_v29  ;;  %487 = vst.msk [vmem:[%s1203_s14 + $0x8] sm:$0xff] %vm74_vm1, %v479_v29  ;;  %v713_v33 = vsel %vm316_vm3, %v712_v31, %v1098_v5 }
 0x404   :  { %v714_v34 = vsel %vm451_vm6, %v713_v33, %v1120_v45 }
 0x405   :  { %488 = vst.msk [vmem:[%s1203_s14 + $0x10] sm:$0xff] %vm74_vm1, %v483_v32  ;;  %489 = vst.msk [vmem:[%s1203_s14 + $0x18] sm:$0xff] %vm74_vm1, %v483_v32  ;;  %v722_v35 = vrot.slane %v714_v34, %v327_v57 }
 0x407   :  { %v723_v36 = vcombine.high %v722_v35, %v722_v35  ;;  %v730_v37 = vrot.slane %v722_v35, %v327_v57 }
 0x409   :  { %v737_v38 = vrot.slane %v723_v36, %v327_v57  ;;  %v741_v39 = vrot.slane %v730_v37, %v346_v2 }
 0x40b   :  { %v745_v40 = vrot.slane %v737_v38, %v346_v2  ;;  %748 = vst.msk [vmem:[%s1204_s16] sm:$0xff] %vm74_vm1, %v741_v39  ;;  %749 = vst.msk [vmem:[%s1204_s16 + $0x8] sm:$0xff] %vm74_vm1, %v741_v39 }
 0x40d   :  { %750 = vst.msk [vmem:[%s1204_s16 + $0x10] sm:$0xff] %vm74_vm1, %v745_v40  ;;  %751 = vst.msk [vmem:[%s1204_s16 + $0x18] sm:$0xff] %vm74_vm1, %v745_v40 }

</bundles_post_ra>
